<compile_context>
chip_gen: v6e
topology: v6e:2x2x1
jax: 0.10.0
libtpu: 0.0.40
codegen_flags: <defaults>
</compile_context>

<pallas_src>
import functools
import math

import jax
import jax.numpy as jnp
from jax.experimental import pallas as pl
from jax.experimental.pallas import tpu as pltpu

BN_EPS = 1e-5          # nn.BatchNorm1d default eps
SAMPLE_NUM = 20        # ETM.reparameterize default sample_num


# ---------------------------------------------------------------------------
# in-kernel helpers
# ---------------------------------------------------------------------------
def _softplus(x):
    # matches F.softplus(beta=1, threshold=20), log1p for better small-x accuracy
    return jnp.where(x > 20.0, x, jnp.log1p(jnp.exp(jnp.minimum(x, 20.0))))


def _batchnorm_train(x):
    # BatchNorm1d(affine=False), training mode: batch mean, biased variance
    mean = jnp.mean(x, axis=0, keepdims=True)
    var = jnp.mean(jnp.square(x - mean), axis=0, keepdims=True)
    return (x - mean) * jax.lax.rsqrt(var + BN_EPS)


def _dot_bf16(x, w):
    # bf16 MXU operands, f32 accumulation
    return jnp.dot(x.astype(jnp.bfloat16), w.astype(jnp.bfloat16),
                   preferred_element_type=jnp.float32)


# ---------------------------------------------------------------------------
# pass 1: encoder + streaming beta-softmax statistics (grid over V, reduction)
# ---------------------------------------------------------------------------
def _etm_encoder_kernel(bows_ref, q1w_ref, rho_ref,                 # per-V-tile
                        q1b_ref, q2w_ref, q2b_ref,
                        headsw_ref, headsb_ref, alphaswt_ref, eps_ref,  # resident
                        theta_ref, kl_ref, betam_ref, betainv_ref,      # outputs
                        acc_h, acc_rs, m_sc, s_sc,                      # scratch
                        *, num_topics):
    j = pl.program_id(0)
    nj = pl.num_programs(0)

    @pl.when(j == 0)
    def _():
        acc_h[...] = jnp.zeros(acc_h.shape, acc_h.dtype)
        acc_rs[...] = jnp.zeros(acc_rs.shape, acc_rs.dtype)
        m_sc[...] = jnp.full(m_sc.shape, -jnp.inf, m_sc.dtype)
        s_sc[...] = jnp.zeros(s_sc.shape, s_sc.dtype)

    bows_t = bows_ref[...]                                           # (B, Tv) f32
    acc_rs[...] += jnp.sum(bows_t, axis=1, keepdims=True)            # bow row sums
    acc_h[...] += _dot_bf16(bows_t, q1w_ref[...])                    # (B, H) partial

    # beta logits for this vocab tile: rho(V,R) @ alphas^T(R,K) -> (Tv, K)
    logit_t = _dot_bf16(rho_ref[...], alphaswt_ref[...])
    t_max = jnp.max(logit_t, axis=0, keepdims=True)                  # (1, K)
    m_new = jnp.maximum(m_sc[...], t_max)
    s_sc[...] = s_sc[...] * jnp.exp(m_sc[...] - m_new) + \
        jnp.sum(jnp.exp(logit_t - m_new), axis=0, keepdims=True)
    m_sc[...] = m_new

    @pl.when(j == nj - 1)
    def _():
        # normalized_bows @ W1 == rowscale * (bows @ W1): recip of B scalars, not B*V divides
        inv_rs = 1.0 / (acc_rs[...] + 1e-10)                         # (B, 1)
        h = _softplus(acc_h[...] * inv_rs + q1b_ref[...])
        h = _softplus(_dot_bf16(h, q2w_ref[...]) + q2b_ref[...])
        # TODO(synk): nn.Dropout(enc_drop=0.5) is a stochastic mask; applied as identity here.

        # fused mu|logsigma head: one (H, 2K) matmul + one BatchNorm, then split
        heads = _batchnorm_train(_dot_bf16(h, headsw_ref[...]) + headsb_ref[...])
        mu = heads[:, :num_topics]                                    # (B, K)
        logsigma = heads[:, num_topics:]                              # (B, K)

        # reparameterize (training): mean over sample_num draws == mu + std * eps_mean
        std = jnp.exp(0.5 * logsigma)
        z = jnp.clip(mu + std * eps_ref[...], 1e-20, 10.0)
        z = z - jnp.max(z, axis=-1, keepdims=True)
        e = jnp.exp(z)
        theta_ref[...] = e * (1.0 / jnp.sum(e, axis=-1, keepdims=True))

        sigma2 = std * std                                            # == exp(logsigma)
        kl_per_doc = -0.5 * jnp.sum(1.0 + logsigma - mu * mu - sigma2,
                                    axis=-1, keepdims=True)           # (B, 1)
        kl_ref[...] = jnp.mean(kl_per_doc, axis=0, keepdims=True)     # (1, 1)

        betam_ref[...] = m_sc[...]                                    # (1, K) max over V
        betainv_ref[...] = 1.0 / s_sc[...]                            # (1, K) 1/denominator


# ---------------------------------------------------------------------------
# pass 2: decoder (grid over V, fully parallel -> megacore-shardable on v7x)
# ---------------------------------------------------------------------------
def _etm_decoder_kernel(rho_ref, bows_ref,                            # per-V-tile
                        alphaswt_ref, theta_ref, betam_ref, betainv_ref,  # resident
                        beta_ref, preds_ref, recon_ref):              # outputs
    logit_t = _dot_bf16(rho_ref[...], alphaswt_ref[...])              # (Tv, K)
    beta_t = jnp.exp(logit_t - betam_ref[...]) * betainv_ref[...]     # (Tv, K) f32
    beta_ref[...] = beta_t.astype(beta_ref.dtype)                     # bf16 writeback

    # preds tile: theta (B, K) contracted with beta_t (Tv, K) over K -> (B, Tv)
    preds_t = jax.lax.dot_general(
        theta_ref[...].astype(jnp.bfloat16), beta_t.astype(jnp.bfloat16),
        dimension_numbers=(((1,), (1,)), ((), ())),
        preferred_element_type=jnp.float32)
    preds_ref[...] = preds_t.astype(preds_ref.dtype)                  # bf16 writeback

    # per-tile partial of sum_{b,v} log(preds + 1e-10) * bows  (host finishes the mean)
    part = jnp.sum(jnp.log(preds_t + 1e-10) * bows_ref[...], axis=1, keepdims=True)
    part = jnp.sum(part, axis=0, keepdims=True)                       # (1, 1)
    recon_ref[...] = jnp.reshape(part, (1, 1, 1))


# ---------------------------------------------------------------------------
# host-side wrapper
# ---------------------------------------------------------------------------
def _vmem_budget(nbytes):
    # explicit, generation-safe scoped-VMEM request (headroom for v7x's 64 MiB physical)
    return int(min(max(2 * nbytes, 8 * 2**20), 48 * 2**20))


def etm_forward(params, bows, eps_mean, *, tile_v=None):
    bsz, vocab = bows.shape
    hid = params['q1_w'].shape[1]
    rho_size, num_topics = params['alphas_wt'].shape

    if tile_v is None:
        tile_v = vocab
        for cand in (512, 256, 128):
            if vocab % cand == 0:
                tile_v = cand
                break
    assert vocab % tile_v == 0, "vocab must be a multiple of the V tile"
    n_v = vocab // tile_v

    const2d = lambda shape: pl.BlockSpec(shape, lambda j: (0, 0))  # resident across grid

    # ---------------- pass 1: encoder + beta softmax stats ----------------
    enc_bytes = (2 * (bsz * tile_v * 4 + tile_v * hid * 2 + tile_v * rho_size * 2)
                 + hid * hid * 2 + hid * 2 * num_topics * 2 + rho_size * num_topics * 2
                 + (2 * hid + 2 * num_topics) * 4 + 2 * bsz * num_topics * 4
                 + (bsz * hid + bsz + 4 * num_topics + 1) * 4)
    enc_cost = pl.CostEstimate(
        flops=2 * vocab * (bsz * hid + rho_size * num_topics)
              + 2 * bsz * hid * (hid + 2 * num_topics),
        transcendentals=vocab * num_topics + 4 * bsz * num_topics + 2 * bsz * hid,
        bytes_accessed=bsz * vocab * 4 + vocab * (hid + rho_size) * 2)

    theta, kl, beta_m, beta_inv = pl.pallas_call(
        functools.partial(_etm_encoder_kernel, num_topics=num_topics),
        grid=(n_v,),
        in_specs=[
            pl.BlockSpec((bsz, tile_v), lambda j: (0, j)),        # bows
            pl.BlockSpec((tile_v, hid), lambda j: (j, 0)),        # q1_w   (V, H)
            pl.BlockSpec((tile_v, rho_size), lambda j: (j, 0)),   # rho    (V, R)
            const2d((1, hid)), const2d((hid, hid)), const2d((1, hid)),
            const2d((hid, 2 * num_topics)), const2d((1, 2 * num_topics)),
            const2d((rho_size, num_topics)), const2d((bsz, num_topics)),
        ],
        out_specs=(const2d((bsz, num_topics)), const2d((1, 1)),
                   const2d((1, num_topics)), const2d((1, num_topics))),
        out_shape=(
            jax.ShapeDtypeStruct((bsz, num_topics), jnp.float32),   # theta
            jax.ShapeDtypeStruct((1, 1), jnp.float32),              # kl_theta
            jax.ShapeDtypeStruct((1, num_topics), jnp.float32),     # beta logit max over V
            jax.ShapeDtypeStruct((1, num_topics), jnp.float32),     # 1 / beta denominator
        ),
        scratch_shapes=[
            pltpu.VMEM((bsz, hid), jnp.float32),       # bows @ W1 accumulator
            pltpu.VMEM((bsz, 1), jnp.float32),         # bow row sums
            pltpu.VMEM((1, num_topics), jnp.float32),  # running max
            pltpu.VMEM((1, num_topics), jnp.float32),  # running sum-exp
        ],
        compiler_params=pltpu.CompilerParams(
            dimension_semantics=("arbitrary",),
            vmem_limit_bytes=_vmem_budget(enc_bytes)),
        cost_estimate=enc_cost,
    )(bows, params['q1_w'], params['rho_w'],
      params['q1_b'], params['q2_w'], params['q2_b'],
      params['heads_w'], params['heads_b'], params['alphas_wt'], eps_mean)

    # ---------------- pass 2: decoder (beta, preds, recon partials) ----------------
    dec_bytes = (2 * (tile_v * rho_size * 2 + bsz * tile_v * 4
                      + tile_v * num_topics * 2 + bsz * tile_v * 2 + 4)
                 + rho_size * num_topics * 2 + bsz * num_topics * 4
                 + 2 * num_topics * 4)
    dec_cost = pl.CostEstimate(
        flops=2 * vocab * (rho_size * num_topics + bsz * num_topics),
        transcendentals=vocab * num_topics + bsz * vocab,
        bytes_accessed=vocab * rho_size * 2 + bsz * vocab * 4
                       + vocab * num_topics * 2 + bsz * vocab * 2)

    beta_vk, preds, recon_parts = pl.pallas_call(
        _etm_decoder_kernel,
        grid=(n_v,),
        in_specs=[
            pl.BlockSpec((tile_v, rho_size), lambda j: (j, 0)),   # rho (V, R)
            pl.BlockSpec((bsz, tile_v), lambda j: (0, j)),        # bows
            const2d((rho_size, num_topics)),                      # alphas^T
            const2d((bsz, num_topics)),                           # theta
            const2d((1, num_topics)), const2d((1, num_topics)),   # beta stats
        ],
        out_specs=(
            pl.BlockSpec((tile_v, num_topics), lambda j: (j, 0)),
            pl.BlockSpec((bsz, tile_v), lambda j: (0, j)),
            pl.BlockSpec((1, 1, 1), lambda j: (j, 0, 0)),
        ),
        out_shape=(
            jax.ShapeDtypeStruct((vocab, num_topics), jnp.bfloat16),  # beta (V, K)
            jax.ShapeDtypeStruct((bsz, vocab), jnp.bfloat16),          # preds
            jax.ShapeDtypeStruct((n_v, 1, 1), jnp.float32),            # recon partials
        ),
        compiler_params=pltpu.CompilerParams(
            dimension_semantics=("parallel",),
            vmem_limit_bytes=_vmem_budget(dec_bytes)),
        cost_estimate=dec_cost,
    )(params['rho_w'], bows, params['alphas_wt'], theta, beta_m, beta_inv)

    recon_loss = -(jnp.sum(recon_parts) / bsz)
    return recon_loss, kl[0, 0], beta_vk, preds, theta


def forward(params, bows, eps_mean):
    """Mirrors ETM.forward(bows, aggregate=True): beta is returned in the (V, K)
    orientation of the reference's `beta.t()`, so no host transpose is needed."""
    # TODO(synk): eval-mode reparameterize (theta from mu only) not implemented; training path only.
    recon, kl, beta_vk, preds, theta = etm_forward(params, bows, eps_mean)
    return ([recon], [kl], [beta_vk], [preds], [theta])


# ---------------------------------------------------------------------------
# deterministic parameter init (shapes follow ETM.__init__; weights bf16 and
# pre-laid-out so every in-kernel matmul is a plain lane-dense x @ W)
# ---------------------------------------------------------------------------
def init_params(key, vocab_size, num_topics, t_hidden, rho_size):
    ks = jax.random.split(key, 10)

    def w(k, shape, scale=0.05):
        return (scale * jax.random.normal(k, shape, jnp.float32)).astype(jnp.bfloat16)

    def b(k, dim, scale=0.01):
        return scale * jax.random.normal(k, (1, dim), jnp.float32)

    mu_w, ls_w = w(ks[4], (t_hidden, num_topics)), w(ks[6], (t_hidden, num_topics))
    mu_b, ls_b = b(ks[5], num_topics), b(ks[7], num_topics)
    return dict(
        q1_w=w(ks[0], (vocab_size, t_hidden)), q1_b=b(ks[1], t_hidden),
        q2_w=w(ks[2], (t_hidden, t_hidden)),   q2_b=b(ks[3], t_hidden),
        heads_w=jnp.concatenate([mu_w, ls_w], axis=1),    # fused mu|logsigma (H, 2K)
        heads_b=jnp.concatenate([mu_b, ls_b], axis=1),    # (1, 2K)
        alphas_wt=w(ks[8], (rho_size, num_topics)),       # alphas.weight^T (R, K)
        rho_w=w(ks[9], (vocab_size, rho_size)),           # rho.weight (V, R)
    )


if __name__ == "__main__":
    # small, TPU-friendly shapes consistent with ETM(num_topics, vocab_size, t_hidden, rho)
    B, V, K, H, R = 16, 512, 128, 128, 128

    root = jax.random.PRNGKey(0)
    pkey, xkey, ekey = jax.random.split(root, 3)
    params = init_params(pkey, V, K, H, R)
    # bag-of-words counts
    bows = jnp.floor(5.0 * jax.random.uniform(xkey, (B, V), dtype=jnp.float32))
    # training-mode reparameterization noise: mean of SAMPLE_NUM iid N(0,1) == N(0, 1/n)
    eps_mean = jax.random.normal(ekey, (B, K), jnp.float32) / math.sqrt(SAMPLE_NUM)

    rec_list, kl_list, beta_list, preds_list, theta_list = forward(params, bows, eps_mean)
    outs = (rec_list[0], kl_list[0], beta_list[0], preds_list[0], theta_list[0])
    outs = jax.block_until_ready(outs)

    for o in outs:
        if not bool(jnp.all(jnp.isfinite(jnp.asarray(o, dtype=jnp.float32)))):
            raise RuntimeError("non-finite output")
    print("KERNEL_OK")
</pallas_src>

<mosaic_0001>
module attributes {stable_mosaic.version = 11 : i64} {
  func.func @_etm_encoder_kernel(%arg0: i32, %arg1: memref<16x512xf32, #tpu.memory_space<vmem>>, %arg2: memref<512x128xbf16, #tpu.memory_space<vmem>>, %arg3: memref<512x128xbf16, #tpu.memory_space<vmem>>, %arg4: memref<1x128xf32, #tpu.memory_space<vmem>>, %arg5: memref<128x128xbf16, #tpu.memory_space<vmem>>, %arg6: memref<1x128xf32, #tpu.memory_space<vmem>>, %arg7: memref<128x256xbf16, #tpu.memory_space<vmem>>, %arg8: memref<1x256xf32, #tpu.memory_space<vmem>>, %arg9: memref<128x128xbf16, #tpu.memory_space<vmem>>, %arg10: memref<16x128xf32, #tpu.memory_space<vmem>>, %arg11: memref<16x128xf32, #tpu.memory_space<vmem>>, %arg12: memref<1x1xf32, #tpu.memory_space<vmem>>, %arg13: memref<1x128xf32, #tpu.memory_space<vmem>>, %arg14: memref<1x128xf32, #tpu.memory_space<vmem>>, %arg15: memref<16x128xf32, #tpu.memory_space<vmem>>, %arg16: memref<16x1xf32, #tpu.memory_space<vmem>>, %arg17: memref<1x128xf32, #tpu.memory_space<vmem>>, %arg18: memref<1x128xf32, #tpu.memory_space<vmem>>) attributes {dimension_semantics = [#tpu.dimension_semantics<arbitrary>], iteration_bounds = array<i64: 1>, scalar_prefetch = 0 : i64, scratch_operands = 4 : i64, tpu.core_type = #tpu.core_type<tc>, window_params = [{transform_indices = @transform_0, window_bounds = array<i64: 16, 512>}, {transform_indices = @transform_1, window_bounds = array<i64: 512, 128>}, {transform_indices = @transform_2, window_bounds = array<i64: 512, 128>}, {pipeline_mode = #tpu.pipeline_mode<synchronous>, transform_indices = @transform_3, window_bounds = array<i64: 1, 128>}, {pipeline_mode = #tpu.pipeline_mode<synchronous>, transform_indices = @transform_4, window_bounds = array<i64: 128, 128>}, {pipeline_mode = #tpu.pipeline_mode<synchronous>, transform_indices = @transform_5, window_bounds = array<i64: 1, 128>}, {pipeline_mode = #tpu.pipeline_mode<synchronous>, transform_indices = @transform_6, window_bounds = array<i64: 128, 256>}, {pipeline_mode = #tpu.pipeline_mode<synchronous>, transform_indices = @transform_7, window_bounds = array<i64: 1, 256>}, {pipeline_mode = #tpu.pipeline_mode<synchronous>, transform_indices = @transform_8, window_bounds = array<i64: 128, 128>}, {pipeline_mode = #tpu.pipeline_mode<synchronous>, transform_indices = @transform_9, window_bounds = array<i64: 16, 128>}, {pipeline_mode = #tpu.pipeline_mode<synchronous>, transform_indices = @transform_10, window_bounds = array<i64: 16, 128>}, {pipeline_mode = #tpu.pipeline_mode<synchronous>, transform_indices = @transform_11, window_bounds = array<i64: 1, 1>}, {pipeline_mode = #tpu.pipeline_mode<synchronous>, transform_indices = @transform_12, window_bounds = array<i64: 1, 128>}, {pipeline_mode = #tpu.pipeline_mode<synchronous>, transform_indices = @transform_13, window_bounds = array<i64: 1, 128>}]} {
    %c0_i32 = arith.constant 0 : i32
    %0 = arith.cmpi eq, %arg0, %c0_i32 : i32
    %1 = arith.extui %0 : i1 to i32
    %c0_i32_0 = arith.constant 0 : i32
    %2 = arith.cmpi ne, %1, %c0_i32_0 : i32
    scf.if %2 {
      %cst_32 = arith.constant 0.000000e+00 : f32
      %38 = vector.broadcast %cst_32 : f32 to vector<16x128xf32>
      %c0_33 = arith.constant 0 : index
      %c0_34 = arith.constant 0 : index
      %39 = vector.load %arg15[%c0_33, %c0_34] : memref<16x128xf32, #tpu.memory_space<vmem>>, vector<16x128xf32>
      tpu.vector_store %arg15[%c0_33, %c0_34], %38 {strides = array<i32>} : memref<16x128xf32, #tpu.memory_space<vmem>>, vector<16x128xf32>,
      %cst_35 = arith.constant 0.000000e+00 : f32
      %40 = vector.broadcast %cst_35 : f32 to vector<16x1xf32>
      %c0_36 = arith.constant 0 : index
      %c0_37 = arith.constant 0 : index
      %41 = vector.load %arg16[%c0_36, %c0_37] : memref<16x1xf32, #tpu.memory_space<vmem>>, vector<16x1xf32>
      tpu.vector_store %arg16[%c0_36, %c0_37], %40 {strides = array<i32>} : memref<16x1xf32, #tpu.memory_space<vmem>>, vector<16x1xf32>,
      %cst_38 = arith.constant 0xFF800000 : f32
      %42 = vector.broadcast %cst_38 : f32 to vector<1x128xf32>
      %c0_39 = arith.constant 0 : index
      %c0_40 = arith.constant 0 : index
      %43 = vector.load %arg17[%c0_39, %c0_40] : memref<1x128xf32, #tpu.memory_space<vmem>>, vector<1x128xf32>
      tpu.vector_store %arg17[%c0_39, %c0_40], %42 {strides = array<i32>} : memref<1x128xf32, #tpu.memory_space<vmem>>, vector<1x128xf32>,
      %cst_41 = arith.constant 0.000000e+00 : f32
      %44 = vector.broadcast %cst_41 : f32 to vector<1x128xf32>
      %c0_42 = arith.constant 0 : index
      %c0_43 = arith.constant 0 : index
      %45 = vector.load %arg18[%c0_42, %c0_43] : memref<1x128xf32, #tpu.memory_space<vmem>>, vector<1x128xf32>
      tpu.vector_store %arg18[%c0_42, %c0_43], %44 {strides = array<i32>} : memref<1x128xf32, #tpu.memory_space<vmem>>, vector<1x128xf32>,
    } else {
    }
    %c0 = arith.constant 0 : index
    %c0_1 = arith.constant 0 : index
    %3 = vector.load %arg1[%c0, %c0_1] : memref<16x512xf32, #tpu.memory_space<vmem>>, vector<16x512xf32>
    %c0_2 = arith.constant 0 : index
    %c0_3 = arith.constant 0 : index
    %4 = vector.load %arg16[%c0_2, %c0_3] : memref<16x1xf32, #tpu.memory_space<vmem>>, vector<16x1xf32>
    %cst = arith.constant dense<0.000000e+00> : vector<16xf32>
    %5 = vector.multi_reduction <add>, %3, %cst [1] : vector<16x512xf32> to vector<16xf32>
    %6 = vector.shape_cast %5 : vector<16xf32> to vector<16x1xf32>
    %7 = arith.addf %4, %6 : vector<16x1xf32>
    %c0_4 = arith.constant 0 : index
    %c0_5 = arith.constant 0 : index
    %8 = vector.load %arg16[%c0_4, %c0_5] : memref<16x1xf32, #tpu.memory_space<vmem>>, vector<16x1xf32>
    tpu.vector_store %arg16[%c0_4, %c0_5], %7 {strides = array<i32>} : memref<16x1xf32, #tpu.memory_space<vmem>>, vector<16x1xf32>,
    %c0_6 = arith.constant 0 : index
    %c0_7 = arith.constant 0 : index
    %9 = vector.load %arg15[%c0_6, %c0_7] : memref<16x128xf32, #tpu.memory_space<vmem>>, vector<16x128xf32>
    %c0_8 = arith.constant 0 : index
    %c0_9 = arith.constant 0 : index
    %10 = vector.load %arg2[%c0_8, %c0_9] : memref<512x128xbf16, #tpu.memory_space<vmem>>, vector<512x128xbf16>
    %11 = arith.truncf %3 : vector<16x512xf32> to vector<16x512xbf16>
    %cst_10 = arith.constant dense<0.000000e+00> : vector<16x128xf32>
    %12 = tpu.matmul %11, %10, %cst_10 {dimension_numbers = #tpu.dot_dimension_numbers<[1], [0], [0], [1], [0, 0, 1, 1], [], []>} : vector<16x512xbf16>, vector<512x128xbf16>, vector<16x128xf32> -> vector<16x128xf32>
    %13 = arith.addf %9, %12 : vector<16x128xf32>
    %c0_11 = arith.constant 0 : index
    %c0_12 = arith.constant 0 : index
    %14 = vector.load %arg15[%c0_11, %c0_12] : memref<16x128xf32, #tpu.memory_space<vmem>>, vector<16x128xf32>
    tpu.vector_store %arg15[%c0_11, %c0_12], %13 {strides = array<i32>} : memref<16x128xf32, #tpu.memory_space<vmem>>, vector<16x128xf32>,
    %c0_13 = arith.constant 0 : index
    %c0_14 = arith.constant 0 : index
    %15 = vector.load %arg3[%c0_13, %c0_14] : memref<512x128xbf16, #tpu.memory_space<vmem>>, vector<512x128xbf16>
    %c0_15 = arith.constant 0 : index
    %c0_16 = arith.constant 0 : index
    %16 = vector.load %arg9[%c0_15, %c0_16] : memref<128x128xbf16, #tpu.memory_space<vmem>>, vector<128x128xbf16>
    %cst_17 = arith.constant dense<0.000000e+00> : vector<512x128xf32>
    %17 = tpu.matmul %15, %16, %cst_17 {dimension_numbers = #tpu.dot_dimension_numbers<[1], [0], [0], [1], [0, 0, 1, 1], [], []>} : vector<512x128xbf16>, vector<128x128xbf16>, vector<512x128xf32> -> vector<512x128xf32>
    %cst_18 = arith.constant dense<0xFF800000> : vector<128xf32>
    %18 = vector.multi_reduction <maximumf>, %17, %cst_18 [0] : vector<512x128xf32> to vector<128xf32>
    %19 = vector.shape_cast %18 : vector<128xf32> to vector<1x128xf32>
    %c0_19 = arith.constant 0 : index
    %c0_20 = arith.constant 0 : index
    %20 = vector.load %arg17[%c0_19, %c0_20] : memref<1x128xf32, #tpu.memory_space<vmem>>, vector<1x128xf32>
    %21 = arith.maximumf %20, %19 : vector<1x128xf32>
    %c0_21 = arith.constant 0 : index
    %c0_22 = arith.constant 0 : index
    %22 = vector.load %arg18[%c0_21, %c0_22] : memref<1x128xf32, #tpu.memory_space<vmem>>, vector<1x128xf32>
    %c0_23 = arith.constant 0 : index
    %c0_24 = arith.constant 0 : index
    %23 = vector.load %arg17[%c0_23, %c0_24] : memref<1x128xf32, #tpu.memory_space<vmem>>, vector<1x128xf32>
    %24 = arith.subf %23, %21 : vector<1x128xf32>
    %25 = math.exp %24 : vector<1x128xf32>
    %26 = arith.mulf %22, %25 : vector<1x128xf32>
    %27 = vector.broadcast %21 : vector<1x128xf32> to vector<512x128xf32>
    %28 = arith.subf %17, %27 : vector<512x128xf32>
    %29 = math.exp %28 : vector<512x128xf32>
    %cst_25 = arith.constant dense<0.000000e+00> : vector<128xf32>
    %30 = vector.multi_reduction <add>, %29, %cst_25 [0] : vector<512x128xf32> to vector<128xf32>
    %31 = vector.shape_cast %30 : vector<128xf32> to vector<1x128xf32>
    %32 = arith.addf %26, %31 : vector<1x128xf32>
    %c0_26 = arith.constant 0 : index
    %c0_27 = arith.constant 0 : index
    %33 = vector.load %arg18[%c0_26, %c0_27] : memref<1x128xf32, #tpu.memory_space<vmem>>, vector<1x128xf32>
    tpu.vector_store %arg18[%c0_26, %c0_27], %32 {strides = array<i32>} : memref<1x128xf32, #tpu.memory_space<vmem>>, vector<1x128xf32>,
    %c0_28 = arith.constant 0 : index
    %c0_29 = arith.constant 0 : index
    %34 = vector.load %arg17[%c0_28, %c0_29] : memref<1x128xf32, #tpu.memory_space<vmem>>, vector<1x128xf32>
    tpu.vector_store %arg17[%c0_28, %c0_29], %21 {strides = array<i32>} : memref<1x128xf32, #tpu.memory_space<vmem>>, vector<1x128xf32>,
    %c0_i32_30 = arith.constant 0 : i32
    %35 = arith.cmpi eq, %arg0, %c0_i32_30 : i32
    %36 = arith.extui %35 : i1 to i32
    %c0_i32_31 = arith.constant 0 : i32
    %37 = arith.cmpi ne, %36, %c0_i32_31 : i32
    scf.if %37 {
      %c0_32 = arith.constant 0 : index
      %c0_33 = arith.constant 0 : index
      %38 = vector.load %arg16[%c0_32, %c0_33] : memref<16x1xf32, #tpu.memory_space<vmem>>, vector<16x1xf32>
      %cst_34 = arith.constant 1.000000e-10 : f32
      %39 = vector.broadcast %cst_34 : f32 to vector<16x1xf32>
      %40 = arith.addf %38, %39 : vector<16x1xf32>
      %cst_35 = arith.constant 1.000000e+00 : f32
      %41 = vector.broadcast %cst_35 : f32 to vector<16x1xf32>
      %42 = arith.divf %41, %40 : vector<16x1xf32>
      %c0_36 = arith.constant 0 : index
      %c0_37 = arith.constant 0 : index
      %43 = vector.load %arg15[%c0_36, %c0_37] : memref<16x128xf32, #tpu.memory_space<vmem>>, vector<16x128xf32>
      %44 = vector.broadcast %42 : vector<16x1xf32> to vector<16x128xf32>
      %45 = arith.mulf %43, %44 : vector<16x128xf32>
      %c0_38 = arith.constant 0 : index
      %c0_39 = arith.constant 0 : index
      %46 = vector.load %arg4[%c0_38, %c0_39] : memref<1x128xf32, #tpu.memory_space<vmem>>, vector<1x128xf32>
      %47 = vector.broadcast %46 : vector<1x128xf32> to vector<16x128xf32>
      %48 = arith.addf %45, %47 : vector<16x128xf32>
      %cst_40 = arith.constant 2.000000e+01 : f32
      %49 = vector.broadcast %cst_40 : f32 to vector<16x128xf32>
      %50 = arith.cmpf ogt, %48, %49 : vector<16x128xf32>
      %cst_41 = arith.constant 2.000000e+01 : f32
      %51 = vector.broadcast %cst_41 : f32 to vector<16x128xf32>
      %52 = arith.minimumf %48, %51 : vector<16x128xf32>
      %53 = math.exp %52 : vector<16x128xf32>
      %54 = math.log1p %53 : vector<16x128xf32>
      %55 = arith.select %50, %48, %54 : vector<16x128xi1>, vector<16x128xf32>
      %c0_42 = arith.constant 0 : index
      %c0_43 = arith.constant 0 : index
      %56 = vector.load %arg5[%c0_42, %c0_43] : memref<128x128xbf16, #tpu.memory_space<vmem>>, vector<128x128xbf16>
      %57 = arith.truncf %55 : vector<16x128xf32> to vector<16x128xbf16>
      %cst_44 = arith.constant dense<0.000000e+00> : vector<16x128xf32>
      %58 = tpu.matmul %57, %56, %cst_44 {dimension_numbers = #tpu.dot_dimension_numbers<[1], [0], [0], [1], [0, 0, 1, 1], [], []>} : vector<16x128xbf16>, vector<128x128xbf16>, vector<16x128xf32> -> vector<16x128xf32>
      %c0_45 = arith.constant 0 : index
      %c0_46 = arith.constant 0 : index
      %59 = vector.load %arg6[%c0_45, %c0_46] : memref<1x128xf32, #tpu.memory_space<vmem>>, vector<1x128xf32>
      %60 = vector.broadcast %59 : vector<1x128xf32> to vector<16x128xf32>
      %61 = arith.addf %58, %60 : vector<16x128xf32>
      %cst_47 = arith.constant 2.000000e+01 : f32
      %62 = vector.broadcast %cst_47 : f32 to vector<16x128xf32>
      %63 = arith.cmpf ogt, %61, %62 : vector<16x128xf32>
      %cst_48 = arith.constant 2.000000e+01 : f32
      %64 = vector.broadcast %cst_48 : f32 to vector<16x128xf32>
      %65 = arith.minimumf %61, %64 : vector<16x128xf32>
      %66 = math.exp %65 : vector<16x128xf32>
      %67 = math.log1p %66 : vector<16x128xf32>
      %68 = arith.select %63, %61, %67 : vector<16x128xi1>, vector<16x128xf32>
      %c0_49 = arith.constant 0 : index
      %c0_50 = arith.constant 0 : index
      %69 = vector.load %arg7[%c0_49, %c0_50] : memref<128x256xbf16, #tpu.memory_space<vmem>>, vector<128x256xbf16>
      %70 = arith.truncf %68 : vector<16x128xf32> to vector<16x128xbf16>
      %cst_51 = arith.constant dense<0.000000e+00> : vector<16x256xf32>
      %71 = tpu.matmul %70, %69, %cst_51 {dimension_numbers = #tpu.dot_dimension_numbers<[1], [0], [0], [1], [0, 0, 1, 1], [], []>} : vector<16x128xbf16>, vector<128x256xbf16>, vector<16x256xf32> -> vector<16x256xf32>
      %c0_52 = arith.constant 0 : index
      %c0_53 = arith.constant 0 : index
      %72 = vector.load %arg8[%c0_52, %c0_53] : memref<1x256xf32, #tpu.memory_space<vmem>>, vector<1x256xf32>
      %73 = vector.broadcast %72 : vector<1x256xf32> to vector<16x256xf32>
      %74 = arith.addf %71, %73 : vector<16x256xf32>
      %cst_54 = arith.constant dense<0.000000e+00> : vector<256xf32>
      %75 = vector.multi_reduction <add>, %74, %cst_54 [0] : vector<16x256xf32> to vector<256xf32>
      %76 = vector.shape_cast %75 : vector<256xf32> to vector<1x256xf32>
      %cst_55 = arith.constant 1.600000e+01 : f32
      %77 = vector.broadcast %cst_55 : f32 to vector<1x256xf32>
      %78 = arith.divf %76, %77 : vector<1x256xf32>
      %79 = vector.broadcast %78 : vector<1x256xf32> to vector<16x256xf32>
      %80 = arith.subf %74, %79 : vector<16x256xf32>
      %81 = arith.mulf %80, %80 : vector<16x256xf32>
      %cst_56 = arith.constant dense<0.000000e+00> : vector<256xf32>
      %82 = vector.multi_reduction <add>, %81, %cst_56 [0] : vector<16x256xf32> to vector<256xf32>
      %83 = vector.shape_cast %82 : vector<256xf32> to vector<1x256xf32>
      %cst_57 = arith.constant 1.600000e+01 : f32
      %84 = vector.broadcast %cst_57 : f32 to vector<1x256xf32>
      %85 = arith.divf %83, %84 : vector<1x256xf32>
      %86 = vector.broadcast %78 : vector<1x256xf32> to vector<16x256xf32>
      %87 = arith.subf %74, %86 : vector<16x256xf32>
      %cst_58 = arith.constant 9.99999974E-6 : f32
      %88 = vector.broadcast %cst_58 : f32 to vector<1x256xf32>
      %89 = arith.addf %85, %88 : vector<1x256xf32>
      %90 = math.rsqrt %89 : vector<1x256xf32>
      %91 = vector.broadcast %90 : vector<1x256xf32> to vector<16x256xf32>
      %92 = arith.mulf %87, %91 : vector<16x256xf32>
      %93 = vector.extract_strided_slice %92 {offsets = [0, 0], sizes = [16, 128], strides = [1, 1]} : vector<16x256xf32> to vector<16x128xf32>
      %94 = vector.extract_strided_slice %92 {offsets = [0, 128], sizes = [16, 128], strides = [1, 1]} : vector<16x256xf32> to vector<16x128xf32>
      %cst_59 = arith.constant 5.000000e-01 : f32
      %95 = vector.broadcast %cst_59 : f32 to vector<16x128xf32>
      %96 = arith.mulf %95, %94 : vector<16x128xf32>
      %97 = math.exp %96 : vector<16x128xf32>
      %c0_60 = arith.constant 0 : index
      %c0_61 = arith.constant 0 : index
      %98 = vector.load %arg10[%c0_60, %c0_61] : memref<16x128xf32, #tpu.memory_space<vmem>>, vector<16x128xf32>
      %99 = arith.mulf %97, %98 : vector<16x128xf32>
      %100 = arith.addf %93, %99 : vector<16x128xf32>
      %cst_62 = arith.constant 9.99999968E-21 : f32
      %cst_63 = arith.constant 1.000000e+01 : f32
      %101 = vector.broadcast %cst_62 : f32 to vector<16x128xf32>
      %102 = arith.maximumf %101, %100 : vector<16x128xf32>
      %103 = vector.broadcast %cst_63 : f32 to vector<16x128xf32>
      %104 = arith.minimumf %103, %102 : vector<16x128xf32>
      %cst_64 = arith.constant dense<0xFF800000> : vector<16xf32>
      %105 = vector.multi_reduction <maximumf>, %104, %cst_64 [1] : vector<16x128xf32> to vector<16xf32>
      %106 = vector.shape_cast %105 : vector<16xf32> to vector<16x1xf32>
      %107 = vector.broadcast %106 : vector<16x1xf32> to vector<16x128xf32>
      %108 = arith.subf %104, %107 : vector<16x128xf32>
      %109 = math.exp %108 : vector<16x128xf32>
      %cst_65 = arith.constant dense<0.000000e+00> : vector<16xf32>
      %110 = vector.multi_reduction <add>, %109, %cst_65 [1] : vector<16x128xf32> to vector<16xf32>
      %111 = vector.shape_cast %110 : vector<16xf32> to vector<16x1xf32>
      %cst_66 = arith.constant 1.000000e+00 : f32
      %112 = vector.broadcast %cst_66 : f32 to vector<16x1xf32>
      %113 = arith.divf %112, %111 : vector<16x1xf32>
      %114 = vector.broadcast %113 : vector<16x1xf32> to vector<16x128xf32>
      %115 = arith.mulf %109, %114 : vector<16x128xf32>
      %c0_67 = arith.constant 0 : index
      %c0_68 = arith.constant 0 : index
      %116 = vector.load %arg11[%c0_67, %c0_68] : memref<16x128xf32, #tpu.memory_space<vmem>>, vector<16x128xf32>
      tpu.vector_store %arg11[%c0_67, %c0_68], %115 {strides = array<i32>} : memref<16x128xf32, #tpu.memory_space<vmem>>, vector<16x128xf32>,
      %117 = arith.mulf %97, %97 : vector<16x128xf32>
      %cst_69 = arith.constant 1.000000e+00 : f32
      %118 = vector.broadcast %cst_69 : f32 to vector<16x128xf32>
      %119 = arith.addf %118, %94 : vector<16x128xf32>
      %120 = arith.mulf %93, %93 : vector<16x128xf32>
      %121 = arith.subf %119, %120 : vector<16x128xf32>
      %122 = arith.subf %121, %117 : vector<16x128xf32>
      %cst_70 = arith.constant dense<0.000000e+00> : vector<16xf32>
      %123 = vector.multi_reduction <add>, %122, %cst_70 [1] : vector<16x128xf32> to vector<16xf32>
      %124 = vector.shape_cast %123 : vector<16xf32> to vector<16x1xf32>
      %cst_71 = arith.constant -5.000000e-01 : f32
      %125 = vector.broadcast %cst_71 : f32 to vector<16x1xf32>
      %126 = arith.mulf %125, %124 : vector<16x1xf32>
      %cst_72 = arith.constant dense<0.000000e+00> : vector<1xf32>
      %127 = vector.multi_reduction <add>, %126, %cst_72 [0] : vector<16x1xf32> to vector<1xf32>
      %128 = vector.shape_cast %127 : vector<1xf32> to vector<1x1xf32>
      %cst_73 = arith.constant 1.600000e+01 : f32
      %129 = vector.broadcast %cst_73 : f32 to vector<1x1xf32>
      %130 = arith.divf %128, %129 : vector<1x1xf32>
      %c0_74 = arith.constant 0 : index
      %c0_75 = arith.constant 0 : index
      %131 = vector.load %arg12[%c0_74, %c0_75] : memref<1x1xf32, #tpu.memory_space<vmem>>, vector<1x1xf32>
      tpu.vector_store %arg12[%c0_74, %c0_75], %130 {strides = array<i32>} : memref<1x1xf32, #tpu.memory_space<vmem>>, vector<1x1xf32>,
      %c0_76 = arith.constant 0 : index
      %c0_77 = arith.constant 0 : index
      %132 = vector.load %arg17[%c0_76, %c0_77] : memref<1x128xf32, #tpu.memory_space<vmem>>, vector<1x128xf32>
      %c0_78 = arith.constant 0 : index
      %c0_79 = arith.constant 0 : index
      %133 = vector.load %arg13[%c0_78, %c0_79] : memref<1x128xf32, #tpu.memory_space<vmem>>, vector<1x128xf32>
      tpu.vector_store %arg13[%c0_78, %c0_79], %132 {strides = array<i32>} : memref<1x128xf32, #tpu.memory_space<vmem>>, vector<1x128xf32>,
      %c0_80 = arith.constant 0 : index
      %c0_81 = arith.constant 0 : index
      %134 = vector.load %arg18[%c0_80, %c0_81] : memref<1x128xf32, #tpu.memory_space<vmem>>, vector<1x128xf32>
      %cst_82 = arith.constant 1.000000e+00 : f32
      %135 = vector.broadcast %cst_82 : f32 to vector<1x128xf32>
      %136 = arith.divf %135, %134 : vector<1x128xf32>
      %c0_83 = arith.constant 0 : index
      %c0_84 = arith.constant 0 : index
      %137 = vector.load %arg14[%c0_83, %c0_84] : memref<1x128xf32, #tpu.memory_space<vmem>>, vector<1x128xf32>
      tpu.vector_store %arg14[%c0_83, %c0_84], %136 {strides = array<i32>} : memref<1x128xf32, #tpu.memory_space<vmem>>, vector<1x128xf32>,
    } else {
    }
    return
  }
  func.func @transform_0(%arg0: i32) -> (i32, i32) {
    %c0_i32 = arith.constant 0 : i32
    %c0_i32_0 = arith.constant 0 : i32
    return %c0_i32, %arg0 : i32, i32
  }
  func.func @transform_1(%arg0: i32) -> (i32, i32) {
    %c0_i32 = arith.constant 0 : i32
    %c0_i32_0 = arith.constant 0 : i32
    return %arg0, %c0_i32 : i32, i32
  }
  func.func @transform_2(%arg0: i32) -> (i32, i32) {
    %c0_i32 = arith.constant 0 : i32
    %c0_i32_0 = arith.constant 0 : i32
    return %arg0, %c0_i32 : i32, i32
  }
  func.func @transform_3(%arg0: i32) -> (i32, i32) {
    %c0_i32 = arith.constant 0 : i32
    %c0_i32_0 = arith.constant 0 : i32
    %c0_i32_1 = arith.constant 0 : i32
    return %c0_i32, %c0_i32_0 : i32, i32
  }
  func.func @transform_4(%arg0: i32) -> (i32, i32) {
    %c0_i32 = arith.constant 0 : i32
    %c0_i32_0 = arith.constant 0 : i32
    %c0_i32_1 = arith.constant 0 : i32
    return %c0_i32, %c0_i32_0 : i32, i32
  }
  func.func @transform_5(%arg0: i32) -> (i32, i32) {
    %c0_i32 = arith.constant 0 : i32
    %c0_i32_0 = arith.constant 0 : i32
    %c0_i32_1 = arith.constant 0 : i32
    return %c0_i32, %c0_i32_0 : i32, i32
  }
  func.func @transform_6(%arg0: i32) -> (i32, i32) {
    %c0_i32 = arith.constant 0 : i32
    %c0_i32_0 = arith.constant 0 : i32
    %c0_i32_1 = arith.constant 0 : i32
    return %c0_i32, %c0_i32_0 : i32, i32
  }
  func.func @transform_7(%arg0: i32) -> (i32, i32) {
    %c0_i32 = arith.constant 0 : i32
    %c0_i32_0 = arith.constant 0 : i32
    %c0_i32_1 = arith.constant 0 : i32
    return %c0_i32, %c0_i32_0 : i32, i32
  }
  func.func @transform_8(%arg0: i32) -> (i32, i32) {
    %c0_i32 = arith.constant 0 : i32
    %c0_i32_0 = arith.constant 0 : i32
    %c0_i32_1 = arith.constant 0 : i32
    return %c0_i32, %c0_i32_0 : i32, i32
  }
  func.func @transform_9(%arg0: i32) -> (i32, i32) {
    %c0_i32 = arith.constant 0 : i32
    %c0_i32_0 = arith.constant 0 : i32
    %c0_i32_1 = arith.constant 0 : i32
    return %c0_i32, %c0_i32_0 : i32, i32
  }
  func.func @transform_10(%arg0: i32) -> (i32, i32) {
    %c0_i32 = arith.constant 0 : i32
    %c0_i32_0 = arith.constant 0 : i32
    %c0_i32_1 = arith.constant 0 : i32
    return %c0_i32, %c0_i32_0 : i32, i32
  }
  func.func @transform_11(%arg0: i32) -> (i32, i32) {
    %c0_i32 = arith.constant 0 : i32
    %c0_i32_0 = arith.constant 0 : i32
    %c0_i32_1 = arith.constant 0 : i32
    return %c0_i32, %c0_i32_0 : i32, i32
  }
  func.func @transform_12(%arg0: i32) -> (i32, i32) {
    %c0_i32 = arith.constant 0 : i32
    %c0_i32_0 = arith.constant 0 : i32
    %c0_i32_1 = arith.constant 0 : i32
    return %c0_i32, %c0_i32_0 : i32, i32
  }
  func.func @transform_13(%arg0: i32) -> (i32, i32) {
    %c0_i32 = arith.constant 0 : i32
    %c0_i32_0 = arith.constant 0 : i32
    %c0_i32_1 = arith.constant 0 : i32
    return %c0_i32, %c0_i32_0 : i32, i32
  }
}

</mosaic_0001>

<bundles_post_ra>
// kernel: tpu_custom_call.1
= control target key start
LH: loop header
LB: loop body
LE: loop exit
PB: predicated region body
PF: predicated region fallthrough
CT: control target
= control target key end

     0   :  { %19 = vsyncpa [#allocation7], 0  ;;  %s3496_s0 = inlined_call_operand.hbm [shape: f32[16,512], index: 0, kind: input, shape index: {}]   ;;  %s3497_s1 = inlined_call_operand.hbm [shape: bf16[512,128], index: 1, kind: input, shape index: {}]   ;;  %s3498_s2 = inlined_call_operand.hbm [shape: bf16[512,128], index: 2, kind: input, shape index: {}]   ;;  %s3499_s3 = inlined_call_operand.hbm [shape: f32[1,128], index: 3, kind: input, shape index: {}]   ;;  %s3500_s4 = inlined_call_operand.hbm [shape: bf16[128,128], index: 4, kind: input, shape index: {}]   ;;  %s3501_s5 = inlined_call_operand.hbm [shape: f32[1,128], index: 5, kind: input, shape index: {}]   ;;  %s3502_s6 = inlined_call_operand.hbm [shape: bf16[128,256], index: 6, kind: input, shape index: {}]   ;;  %s3503_s7 = inlined_call_operand.hbm [shape: f32[1,256], index: 7, kind: input, shape index: {}]   ;;  %s3504_s8 = inlined_call_operand.hbm [shape: bf16[128,128], index: 8, kind: input, shape index: {}]   ;;  %s3505_s9 = inlined_call_operand.vmem [shape: f32[16,128], index: 9, kind: input, shape index: {}]   ;;  %s3506_s10 = inlined_call_operand.hbm [shape: f32[16,128], index: 10, kind: output, shape index: {0}]   ;;  %s3507_s11 = inlined_call_operand.hbm [shape: f32[1,1], index: 11, kind: output, shape index: {1}]   ;;  %s3508_s12 = inlined_call_operand.hbm [shape: f32[1,128], index: 12, kind: output, shape index: {2}]   ;;  %s3509_s13 = inlined_call_operand.hbm [shape: f32[1,128], index: 13, kind: output, shape index: {3}]  }
   0x1   :  { %20 = vsyncpa [#allocation10], 0 }
   0x2   :  { %21 = vsyncpa [#allocation13], 0 }
   0x3   :  { %22 = vsyncpa [#allocation16], 0 }
   0x4   :  { %23 = vsyncpa [#allocation19], 0 }
   0x5   :  { %24 = vsyncpa [#allocation8], 0 }
   0x6   :  { %25 = vsyncpa [#allocation23], 0 }
   0x7   :  { %26 = vsyncpa [#allocation26], 0  ;;  %s2914_s25 = smov [#allocation9]  }
   0x8   :  { %s44_s26 = sshll.u32 %s2914_s25, 4  ;;  %s45_s26 = int_to_ptr.vmem [resolvable:$true] %s44_s26 }
   0x9   :  { %s2646_s27 = scalar_lea.vmem %s45_s26, 4096  ;;  %p2651_p1 = scmp.lt.s32.totalorder %s45_s26, %s45_s26 }
   0xa   :  { %p2647_p0 = scmp.ne.s32.totalorder %s45_s26, %s2646_s27  ;;  %p2652_p2 = scmp.lt.s32.totalorder %s2646_s27, %s2646_s27 }
   0xc   :  { %p2653_p3 = por %p2652_p2, %p2651_p1 }
   0xe   :  { %p2654_p4 = pnand %p2653_p3, %p2647_p0 }
  0x10   :  { %2657 = shalt.err (!%p2654_p4)
}
  0x11   :  { %s2915_s28 = smov 64   ;;  %s2916_s29 = smov 4  }
  0x12   :  { %50 = dma.hbm_to_vmem [thread:$0]  %s3497_s1, 4096, %s45_s26, [#allocation10], %s2915_s28, %s2915_s28, %s2916_s29  }
  0x13   :  { %s2917_s15 = smov [#allocation12]   ;;  %s2918_s17 = smov [#allocation15]  }
  0x14   :  { %s69_s16 = sshll.u32 %s2917_s15, 4  ;;  %s91_s18 = sshll.u32 %s2918_s17, 4  ;;  %s70_s16 = int_to_ptr.vmem [resolvable:$true] %s69_s16  ;;  %s92_s18 = int_to_ptr.vmem [resolvable:$true] %s91_s18 }
  0x15   :  { %s2666_s19 = scalar_lea.vmem %s70_s16, 16  ;;  %s2670_s20 = scalar_lea.vmem %s70_s16, 32 }
  0x16   :  { %p2667_p5 = scmp.ne.s32.totalorder %s70_s16, %s2666_s19  ;;  %p2671_p6 = scmp.lt.s32.totalorder %s70_s16, %s70_s16 }
  0x17   :  { %p2672_p7 = scmp.lt.s32.totalorder %s2670_s20, %s2666_s19 }
  0x19   :  { %p2673_p8 = por %p2672_p7, %p2671_p6 }
  0x1b   :  { %p2674_p9 = pnand %p2673_p8, %p2667_p5 }
  0x1d   :  { %2677 = shalt.err (!%p2674_p9)
}
  0x1e   :  { %72 = dma.hbm_to_vmem [thread:$0]  %s3499_s3, 16, %s70_s16, [#allocation13]  }
  0x1f   :  { %s2686_s23 = scalar_lea.vmem %s92_s18, 16  ;;  %s2690_s1 = scalar_lea.vmem %s92_s18, 32 }
  0x20   :  { %p2687_p10 = scmp.ne.s32.totalorder %s92_s18, %s2686_s23  ;;  %p2691_p11 = scmp.lt.s32.totalorder %s92_s18, %s92_s18 }
  0x21   :  { %p2692_p12 = scmp.lt.s32.totalorder %s2690_s1, %s2686_s23 }
  0x23   :  { %p2693_p13 = por %p2692_p12, %p2691_p11 }
  0x25   :  { %p2694_p0 = pnand %p2693_p13, %p2687_p10 }
  0x27   :  { %2697 = shalt.err (!%p2694_p0)
}
  0x28   :  { %94 = dma.hbm_to_vmem [thread:$0]  %s3501_s5, 16, %s92_s18, [#allocation16]  }
  0x29   :  { %s2919_s26 = smov [#allocation18]   ;;  %s2920_s30 = smov [#allocation6]  }
  0x2a   :  { %s113_s27 = sshll.u32 %s2919_s26, 4  ;;  %s32_s14 = sshll.u32 %s2920_s30, 4  ;;  %s114_s27 = int_to_ptr.vmem [resolvable:$true] %s113_s27  ;;  %s33_s14 = int_to_ptr.vmem [resolvable:$true] %s32_s14 }
  0x2b   :  { %s2706_s15 = scalar_lea.vmem %s114_s27, 32  ;;  %p2711_p2 = scmp.lt.s32.totalorder %s114_s27, %s114_s27 }
  0x2c   :  { %p2707_p1 = scmp.ne.s32.totalorder %s114_s27, %s2706_s15  ;;  %p2712_p3 = scmp.lt.s32.totalorder %s2706_s15, %s2706_s15 }
  0x2e   :  { %p2713_p4 = por %p2712_p3, %p2711_p2 }
  0x30   :  { %p2714_p5 = pnand %p2713_p4, %p2707_p1 }
  0x32   :  { %2717 = shalt.err (!%p2714_p5)
}
  0x33   :  { %116 = dma.hbm_to_vmem [thread:$0]  %s3503_s7, 32, %s114_s27, [#allocation19]  }
  0x34   :  { %s2726_s17 = scalar_lea.vmem %s33_s14, 1024  ;;  %p2731_p7 = scmp.lt.s32.totalorder %s33_s14, %s33_s14 }
  0x35   :  { %p2727_p6 = scmp.ne.s32.totalorder %s33_s14, %s2726_s17  ;;  %p2732_p8 = scmp.lt.s32.totalorder %s2726_s17, %s2726_s17 }
  0x37   :  { %p2733_p9 = por %p2732_p8, %p2731_p7 }
  0x39   :  { %p2734_p10 = pnand %p2733_p9, %p2727_p6 }
  0x3b   :  { %2737 = shalt.err (!%p2734_p10)
}
  0x3c   :  { %s2921_s5 = smov 512   ;;  %s2922_s18 = smov 32  }
  0x3d   :  { %38 = dma.hbm_to_vmem [thread:$0]  %s3496_s0, 1024, %s33_s14, [#allocation7], %s2921_s5, %s2921_s5, %s2922_s18  }
  0x3e   :  { %s2923_s21 = smov [#allocation11]   ;;  %s2924_s23 = smov [#allocation14]  }
  0x3f   :  { %s56_s22 = sshll.u32 %s2923_s21, 4  ;;  %s78_s1 = sshll.u32 %s2924_s23, 4  ;;  %s57_s22 = int_to_ptr.vmem [resolvable:$true] %s56_s22  ;;  %s79_s1 = int_to_ptr.vmem [resolvable:$true] %s78_s1 }
  0x40   :  { %s2746_s7 = scalar_lea.vmem %s57_s22, 4096  ;;  %p2751_p12 = scmp.lt.s32.totalorder %s57_s22, %s57_s22 }
  0x41   :  { %p2747_p11 = scmp.ne.s32.totalorder %s57_s22, %s2746_s7  ;;  %p2752_p13 = scmp.lt.s32.totalorder %s2746_s7, %s2746_s7 }
  0x43   :  { %p2753_p0 = por %p2752_p13, %p2751_p12 }
  0x45   :  { %p2754_p1 = pnand %p2753_p0, %p2747_p11 }
  0x47   :  { %2757 = shalt.err (!%p2754_p1)
}
  0x48   :  { %62 = dma.hbm_to_vmem [thread:$0]  %s3498_s2, 4096, %s57_s22, [#allocation10], %s2915_s28, %s2915_s28, %s2916_s29  }
  0x49   :  { %s2766_s0 = scalar_lea.vmem %s79_s1, 1024  ;;  %p2771_p3 = scmp.lt.s32.totalorder %s79_s1, %s79_s1 }
  0x4a   :  { %p2767_p2 = scmp.ne.s32.totalorder %s79_s1, %s2766_s0  ;;  %p2772_p4 = scmp.lt.s32.totalorder %s2766_s0, %s2766_s0 }
  0x4c   :  { %p2773_p5 = por %p2772_p4, %p2771_p3 }
  0x4e   :  { %p2774_p6 = pnand %p2773_p5, %p2767_p2 }
  0x50   :  { %2777 = shalt.err (!%p2774_p6)
}
  0x51   :  { %84 = dma.hbm_to_vmem [thread:$0]  %s3500_s4, 1024, %s79_s1, [#allocation13], %s2915_s28, %s2915_s28, %s2916_s29  }
  0x52   :  { %s2925_s30 = smov [#allocation17]  }
  0x53   :  { %s100_s14 = sshll.u32 %s2925_s30, 4  ;;  %s101_s14 = int_to_ptr.vmem [resolvable:$true] %s100_s14 }
  0x54   :  { %s2786_s15 = scalar_lea.vmem %s101_s14, 2048  ;;  %p2791_p8 = scmp.lt.s32.totalorder %s101_s14, %s101_s14 }
  0x55   :  { %p2787_p7 = scmp.ne.s32.totalorder %s101_s14, %s2786_s15  ;;  %p2792_p9 = scmp.lt.s32.totalorder %s2786_s15, %s2786_s15 }
  0x57   :  { %p2793_p10 = por %p2792_p9, %p2791_p8 }
  0x59   :  { %p2794_p11 = pnand %p2793_p10, %p2787_p7 }
  0x5b   :  { %2797 = shalt.err (!%p2794_p11)
}
  0x5c   :  { %s2926_s2 = smov 128   ;;  %s2927_s3 = smov 8  }
  0x5d   :  { %106 = dma.hbm_to_vmem [thread:$0]  %s3502_s6, 2048, %s101_s14, [#allocation16], %s2926_s2, %s2926_s2, %s2927_s3  }
  0x5e   :  { %s2928_s4 = smov [#allocation20]  }
  0x5f   :  { %s122_s5 = sshll.u32 %s2928_s4, 4  ;;  %s123_s5 = int_to_ptr.vmem [resolvable:$true] %s122_s5 }
  0x60   :  { %s2806_s18 = scalar_lea.vmem %s123_s5, 1024  ;;  %p2811_p13 = scmp.lt.s32.totalorder %s123_s5, %s123_s5 }
  0x61   :  { %p2807_p12 = scmp.ne.s32.totalorder %s123_s5, %s2806_s18  ;;  %p2812_p0 = scmp.lt.s32.totalorder %s2806_s18, %s2806_s18 }
  0x63   :  { %p2813_p1 = por %p2812_p0, %p2811_p13 }
  0x65   :  { %p2814_p2 = pnand %p2813_p1, %p2807_p12 }
  0x67   :  { %2817 = shalt.err (!%p2814_p2)
}
  0x68   :  { %128 = dma.hbm_to_vmem [thread:$0]  %s3504_s8, 1024, %s123_s5, [#allocation19], %s2915_s28, %s2915_s28, %s2916_s29  }
  0x69   :  { %2898 = dma.done.wait [#allocation7], 1024  }
  0x6a   :  { %2899 = vsyncadd [#allocation7], 4294966272 }
  0x6b   :  { %2900 = dma.done.wait [#allocation10], 8192  }
  0x6c   :  { %2901 = vsyncadd [#allocation10], 4294959104 }
  0x6d   :  { %2902 = dma.done.wait [#allocation13], 1040  }
  0x6e   :  { %2903 = vsyncadd [#allocation13], 4294966256 }
  0x6f   :  { %2904 = dma.done.wait [#allocation16], 2064  }
  0x70   :  { %2905 = vsyncadd [#allocation16], 4294965232 }
  0x71   :  { %2906 = dma.done.wait [#allocation19], 1056  }
  0x72   :  { %2907 = vsyncadd [#allocation19], 4294966240  ;;  %v2366_v0 = vld [vmem:[#allocation9 + $0x78] sm:$0xff]   ;;  %v3049_v1 = vld [vmem:[#allocation6] sm:$0xff]  ;;  %vm165_vm0 = vcmask 7168   ;;  %v2929_v23 = vmov 0.0  }
  0x73   :  { %v171_v2 = vld [vmem:[#allocation6 + $0x8] sm:$0xff]  ;;  %v3051_v3 = vld [vmem:[#allocation6 + $0x10] sm:$0xff]  ;;  %2132 = vmatprep.subr.bf16.mxu0 %v2366_v0  ;;  %v173_v4 = vld [vmem:[#allocation6 + $0x18] sm:$0xff]  ;;  %166 = vst.msk [vmem:[#allocation3] sm:$0xff] %vm165_vm0, %v2929_v23  ;;  %v3510_v33 = vmov 0   ;;  %vm2931_vm1 = vmmov 0  }
  0x74   :  { %v180_v5 = vadd.f32 %v171_v2, %v3049_v1  ;;  %v2367_v6 = vld [vmem:[#allocation9 + $0x38] sm:$0xff]   ;;  %v2368_v8 = vld [vmem:[#allocation9 + $0x70] sm:$0xff]   ;;  %v3055_v9 = vld [vmem:[#allocation6 + $0x20] sm:$0xff]  ;;  %167 = vst.msk [vmem:[#allocation3 + $0x8] sm:$0xff] %vm165_vm0, %v2929_v23  ;;  %2364 = vset.pattern.permute.xlu1 %v3510_v33  ;;  %2365 = vset.pattern.permute.xlu0 %v3510_v33  ;;  %vm1964_vm10 = vcmask 0  }
  0x75   :  { %v175_v10 = vld [vmem:[#allocation6 + $0x28] sm:$0xff]  ;;  %2133 = vmatpush3.bf16.msra.mxu0 %v2367_v6  ;;  %v3057_v11 = vld [vmem:[#allocation6 + $0x30] sm:$0xff]  ;;  %v177_v12 = vld [vmem:[#allocation6 + $0x38] sm:$0xff]  ;;  %169 = vst [vmem:[#allocation5] sm:$0x1] %v2929_v23  ;;  %v261_v41 = vpack.c.bf16 %v3055_v9, %v3049_v1 }
  0x76   :  { %v181_v7 = vadd.f32 %v180_v5, %v3051_v3  ;;  %v185_v13 = vadd.f32 %v175_v10, %v3055_v9  ;;  %v262_v14 = vpack.c.bf16 %v175_v10, %v171_v2  ;;  %2134 = vmatprep.subr.bf16.mxu0 %v2368_v8  ;;  %v2369_v16 = vld [vmem:[#allocation9 + $0x30] sm:$0xff]   ;;  %v264_v17 = vpack.c.bf16 %v177_v12, %v173_v4  ;;  %v2370_v19 = vld [vmem:[#allocation9 + $0x68] sm:$0xff]   ;;  %v2372_v22 = vld [vmem:[#allocation9 + $0x60] sm:$0xff]  }
  0x77   :  { %v2371_v21 = vld [vmem:[#allocation9 + $0x28] sm:$0xff]   ;;  %v2373_v24 = vld [vmem:[#allocation9 + $0x20] sm:$0xff]   ;;  %v2374_v25 = vld [vmem:[#allocation9 + $0x58] sm:$0xff]   ;;  %v263_v59 = vpack.c.bf16 %v3057_v11, %v3051_v3 }
  0x78   :  { %v182_v15 = vadd.f32 %v181_v7, %v173_v4  ;;  %v186_v18 = vadd.f32 %v185_v13, %v3057_v11  ;;  %489 = vmatprep.mubr.bf16.mxu0 %v262_v14  ;;  %530 = vmatprep.mubr.bf16.mxu1 %v264_v17  ;;  %v2375_v26 = vld [vmem:[#allocation9 + $0x18] sm:$0xff]   ;;  %v2376_v27 = vld [vmem:[#allocation9 + $0x50] sm:$0xff]   ;;  %v2378_v29 = vld [vmem:[#allocation9 + $0x48] sm:$0xff]  }
  0x79   :  { %2135 = vmatpush3.bf16.msra.mxu0 %v2369_v16  ;;  %v2377_v28 = vld [vmem:[#allocation9 + $0x10] sm:$0xff]   ;;  %v2379_v30 = vld [vmem:[#allocation9 + $0x8] sm:$0xff]   ;;  %v2387_v31 = vld [vmem:[#allocation9 + $0xf8] sm:$0xff]  }
  0x7a   :  { %183 = vadd.xlane.f32.xlu0 %v182_v15  ;;  %v187_v20 = vadd.f32 %v186_v18, %v177_v12  ;;  %2136 = vmatprep.subr.bf16.mxu0 %v2370_v19  ;;  %v2388_v32 = vld [vmem:[#allocation9 + $0xb8] sm:$0xff]   ;;  %v2380_v34 = vld [vmem:[#allocation9 + $0x40] sm:$0xff]   ;;  %v2390_v36 = vld [vmem:[#allocation9 + $0xf0] sm:$0xff]  }
  0x7b   :  { %2154 = vmatprep.subr.bf16.mxu1 %v2387_v31  ;;  %v2381_v35 = vld [vmem:[#allocation9] sm:$0xff]   ;;  %v2391_v37 = vld [vmem:[#allocation9 + $0xb0] sm:$0xff]   ;;  %v2393_v39 = vld [vmem:[#allocation9 + $0xe8] sm:$0xff]  }
  0x7c   :  { %2155 = vmatpush3.bf16.msra.mxu1 %v2388_v32  ;;  %v2382_v38 = vld [vmem:[#allocation20 + $0x38] sm:$0xff]   ;;  %v2394_v40 = vld [vmem:[#allocation9 + $0xa8] sm:$0xff]   ;;  %v2383_v42 = vld [vmem:[#allocation20 + $0x30] sm:$0xff]  }
  0x7d   :  { %2137 = vmatpush3.bf16.msra.mxu0 %v2371_v21  ;;  %2156 = vmatprep.subr.bf16.mxu1 %v2390_v36  ;;  %v2396_v43 = vld [vmem:[#allocation9 + $0xe0] sm:$0xff]   ;;  %v2400_v46 = vld [vmem:[#allocation9 + $0xd8] sm:$0xff]   ;;  %v2384_v47 = vld [vmem:[#allocation20 + $0x28] sm:$0xff]  }
  0x7e   :  { %188 = vadd.xlane.f32.xlu0 %v187_v20  ;;  %2138 = vmatprep.subr.bf16.mxu0 %v2372_v22  ;;  %v2397_v44 = vld [vmem:[#allocation11] sm:$0xff]   ;;  %v2401_v48 = vld [vmem:[#allocation9 + $0x98] sm:$0xff]   ;;  %v2402_v49 = vld [vmem:[#allocation9 + $0xd0] sm:$0xff]  }
  0x7f   :  { %v2398_v45 = vld [vmem:[#allocation9 + $0xa0] sm:$0xff]   ;;  %v2404_v51 = vld [vmem:[#allocation9 + $0x90] sm:$0xff]   ;;  %v2406_v52 = vld [vmem:[#allocation9 + $0xc8] sm:$0xff]  }
  0x80   :  { %2157 = vmatpush3.bf16.msra.mxu1 %v2391_v37  ;;  %v2385_v50 = vld [vmem:[#allocation20 + $0x20] sm:$0xff]   ;;  %v2386_v53 = vld [vmem:[#allocation20 + $0x18] sm:$0xff]   ;;  %v2389_v56 = vld [vmem:[#allocation20 + $0x10] sm:$0xff]  }
  0x81   :  { %2139 = vmatpush3.bf16.msra.mxu0 %v2373_v24  ;;  %2158 = vmatprep.subr.bf16.mxu1 %v2393_v39  ;;  %v2407_v54 = vld [vmem:[#allocation9 + $0x88] sm:$0xff]   ;;  %v2408_v55 = vld [vmem:[#allocation9 + $0xc0] sm:$0xff]   ;;  %v2422_v61 = vld [vmem:[#allocation11 + $0xb0] sm:$0xff]  }
  0x82   :  { %2140 = vmatprep.subr.bf16.mxu0 %v2374_v25  ;;  %v2410_v57 = vld [vmem:[#allocation9 + $0x80] sm:$0xff]   ;;  %v2392_v58 = vld [vmem:[#allocation20 + $0x8] sm:$0xff]   ;;  %v2405_v0 = vld [vmem:[#allocation11 + $0x18] sm:$0xff]  }
  0x83   :  { %v2395_v60 = vld [vmem:[#allocation20] sm:$0xff]   ;;  %v2403_v63 = vld [vmem:[#allocation11 + $0x10] sm:$0xff]   ;;  %v2423_v4 = vld [vmem:[#allocation11 + $0xb8] sm:$0xff]  }
  0x84   :  { %2159 = vmatpush3.bf16.msra.mxu1 %v2394_v40  ;;  %v2399_v62 = vld [vmem:[#allocation11 + $0x8] sm:$0xff]   ;;  %v2409_v1 = vld [vmem:[#allocation11 + $0x20] sm:$0xff]   ;;  %v2412_v3 = vld [vmem:[#allocation11 + $0x30] sm:$0xff]  }
  0x85   :  { %2141 = vmatpush3.bf16.msra.mxu0 %v2375_v26  ;;  %2160 = vmatprep.subr.bf16.mxu1 %v2396_v43  ;;  %v2411_v2 = vld [vmem:[#allocation11 + $0x28] sm:$0xff]   ;;  %v2426_v5 = vld [vmem:[#allocation11 + $0xc0] sm:$0xff]   ;;  %v2413_v6 = vld [vmem:[#allocation11 + $0x38] sm:$0xff]  }
  0x86   :  { %2142 = vmatprep.subr.bf16.mxu0 %v2376_v27  ;;  %v2414_v7 = vld [vmem:[#allocation11 + $0x40] sm:$0xff]   ;;  %v2427_v8 = vld [vmem:[#allocation11 + $0xc8] sm:$0xff]   ;;  %v2430_v9 = vld [vmem:[#allocation11 + $0xd0] sm:$0xff]  }
  0x87   :  { %v2415_v10 = vld [vmem:[#allocation11 + $0x48] sm:$0xff]   ;;  %v2416_v11 = vld [vmem:[#allocation11 + $0x50] sm:$0xff]   ;;  %v2431_v12 = vld [vmem:[#allocation11 + $0xd8] sm:$0xff]  }
  0x88   :  { %2161 = vmatpush3.bf16.msra.mxu1 %v2398_v45  ;;  %v2434_v13 = vld [vmem:[#allocation11 + $0xe0] sm:$0xff]   ;;  %v2417_v14 = vld [vmem:[#allocation11 + $0x58] sm:$0xff]   ;;  %v2435_v16 = vld [vmem:[#allocation11 + $0xe8] sm:$0xff]  }
  0x89   :  { %2143 = vmatpush3.bf16.msra.mxu0 %v2377_v28  ;;  %2162 = vmatprep.subr.bf16.mxu1 %v2400_v46  ;;  %v2418_v15 = vld [vmem:[#allocation11 + $0x60] sm:$0xff]   ;;  %v2436_v17 = vld [vmem:[#allocation11 + $0xf0] sm:$0xff]   ;;  %v2419_v18 = vld [vmem:[#allocation11 + $0x68] sm:$0xff]  }
  0x8a   :  { %2144 = vmatprep.subr.bf16.mxu0 %v2378_v29  ;;  %v2420_v19 = vld [vmem:[#allocation11 + $0x70] sm:$0xff]   ;;  %v2437_v20 = vld [vmem:[#allocation11 + $0xf8] sm:$0xff]   ;;  %v2424_v22 = vld [vmem:[#allocation11 + $0x80] sm:$0xff]  }
  0x8b   :  { %v2421_v21 = vld [vmem:[#allocation11 + $0x78] sm:$0xff]   ;;  %v2425_v24 = vld [vmem:[#allocation11 + $0x88] sm:$0xff]   ;;  %v2428_v25 = vld [vmem:[#allocation11 + $0x90] sm:$0xff]  }
  0x8c   :  { %2163 = vmatpush3.bf16.msra.mxu1 %v2401_v48  ;;  %v2429_v26 = vld [vmem:[#allocation11 + $0x98] sm:$0xff]   ;;  %v2432_v27 = vld [vmem:[#allocation11 + $0xa0] sm:$0xff]   ;;  %v178_v28 = vld [vmem:[#allocation3] sm:$0xff] }
  0x8d   :  { %2145 = vmatpush3.bf16.msra.mxu0 %v2379_v30  ;;  %2164 = vmatprep.subr.bf16.mxu1 %v2402_v49  ;;  %v2433_v29 = vld [vmem:[#allocation11 + $0xa8] sm:$0xff]   ;;  %v179_v32 = vld [vmem:[#allocation3 + $0x8] sm:$0xff] }
  0x8e   :  { %2146 = vmatprep.subr.bf16.mxu0 %v2380_v34  ;;  %v2439_v43 = vld [vmem:[#allocation14 + $0x30] sm:$0xff]   ;;  %v2441_v45 = vld [vmem:[#allocation14 + $0x20] sm:$0xff]   ;;  %v2442_v46 = vld [vmem:[#allocation14 + $0x18] sm:$0xff]  }
  0x8f   :  { %v2444_v48 = vld [vmem:[#allocation14 + $0x8] sm:$0xff]   ;;  %v2445_v49 = vld [vmem:[#allocation14] sm:$0xff]  }
  0x90   :  { %2165 = vmatpush3.bf16.msra.mxu1 %v2404_v51 }
  0x91   :  { %2147 = vmatpush3.bf16.msra.mxu0 %v2381_v35  ;;  %2166 = vmatprep.subr.bf16.mxu1 %v2406_v52 }
  0x92   :  { %2225 = vmatprep.subr.bf16.mxu0 %v2382_v38 }
  0x94   :  { %490 = vmatmul.mubr.bf16.vlgmr.msra.gmra.mxu0 %v261_v41  ;;  %2167 = vmatpush3.bf16.msra.mxu1 %v2407_v54 }
  0x95   :  { %2226 = vmatpush3.bf16.msra.mxu0 %v2382_v38  ;;  %2241 = vmatprep.mubr.bf16.mxu0 %v2397_v44  ;;  %v2440_v44 = vld [vmem:[#allocation14 + $0x28] sm:$0xff]  }
  0x96   :  { %2227 = vmatprep.subr.bf16.mxu0 %v2383_v42  ;;  %2168 = vmatprep.subr.bf16.mxu1 %v2408_v55 }
  0x98   :  { %2169 = vmatpush3.bf16.msra.mxu1 %v2410_v57 }
  0x99   :  { %2228 = vmatpush3.bf16.msra.mxu0 %v2383_v42  ;;  %2325 = vmatprep.subr.bf16.mxu1 %v2382_v38 }
  0x9a   :  { %2229 = vmatprep.subr.bf16.mxu0 %v2384_v47 }
  0x9b   :  { %531 = vmatmul.mubr.bf16.vlgmr.msra.gmra.mxu1 %v263_v59 }
  0x9c   :  { %2333 = vmatpush3.bf16.msra.mxu1 %v2382_v38  ;;  %2285 = vmatprep.mubr.bf16.mxu1 %v2422_v61 }
  0x9d   :  { %2230 = vmatpush3.bf16.msra.mxu0 %v2384_v47  ;;  %2326 = vmatprep.subr.bf16.mxu1 %v2383_v42 }
  0x9e   :  { %2231 = vmatprep.subr.bf16.mxu0 %v2385_v50 }
  0xa0   :  { %2334 = vmatpush3.bf16.msra.mxu1 %v2383_v42  ;;  %v2438_v42 = vld [vmem:[#allocation14 + $0x38] sm:$0xff]  }
  0xa1   :  { %2232 = vmatpush3.bf16.msra.mxu0 %v2385_v50  ;;  %2327 = vmatprep.subr.bf16.mxu1 %v2384_v47 }
  0xa2   :  { %2233 = vmatprep.subr.bf16.mxu0 %v2386_v53 }
  0xa4   :  { %2335 = vmatpush3.bf16.msra.mxu1 %v2384_v47  ;;  %v2443_v47 = vld [vmem:[#allocation14 + $0x10] sm:$0xff]  }
  0xa5   :  { %2234 = vmatpush3.bf16.msra.mxu0 %v2386_v53  ;;  %2328 = vmatprep.subr.bf16.mxu1 %v2385_v50 }
  0xa6   :  { %2235 = vmatprep.subr.bf16.mxu0 %v2389_v56 }
  0xa8   :  { %2336 = vmatpush3.bf16.msra.mxu1 %v2385_v50  ;;  %v2932_v50 = vmov -inf  }
  0xa9   :  { %2236 = vmatpush3.bf16.msra.mxu0 %v2389_v56  ;;  %2329 = vmatprep.subr.bf16.mxu1 %v2386_v53  ;;  %168 = vst [vmem:[#allocation4] sm:$0x1] %v2932_v50 }
  0xaa   :  { %2237 = vmatprep.subr.bf16.mxu0 %v2392_v58 }
  0xac   :  { %2337 = vmatpush3.bf16.msra.mxu1 %v2386_v53 }
  0xad   :  { %2238 = vmatpush3.bf16.msra.mxu0 %v2392_v58  ;;  %2330 = vmatprep.subr.bf16.mxu1 %v2389_v56 }
  0xae   :  { %2239 = vmatprep.subr.bf16.mxu0 %v2395_v60 }
  0xb0   :  { %2338 = vmatpush3.bf16.msra.mxu1 %v2389_v56 }
  0xb1   :  { %2240 = vmatpush3.bf16.msra.mxu0 %v2395_v60  ;;  %2331 = vmatprep.subr.bf16.mxu1 %v2392_v58 }
  0xb4   :  { %2242 = vmatmul.mubr.bf16.vlgmr.msra.gmra.mxu0 %v2399_v62  ;;  %2339 = vmatpush3.bf16.msra.mxu1 %v2392_v58 }
  0xb5   :  { %2245 = vmatprep.mubr.bf16.mxu0 %v2403_v63  ;;  %2332 = vmatprep.subr.bf16.mxu1 %v2395_v60 }
  0xb8   :  { %2340 = vmatpush3.bf16.msra.mxu1 %v2395_v60 }
  0xb9   :  { %2305 = vmatprep.subr.bf16.mxu1 %v2929_v23 }
  0xbb   :  { %2286 = vmatmul.mubr.bf16.vlgmr.msra.gmra.mxu1 %v2423_v4 }
  0xbc   :  { %2246 = vmatmul.mubr.bf16.gmra.mxu0 %v2405_v0  ;;  %2289 = vmatprep.mubr.bf16.mxu1 %v2426_v5 }
  0xbd   :  { %2249 = vmatprep.mubr.bf16.mxu0 %v2409_v1  ;;  %2306 = vmatpush3.bf16.msra.mxu1 %v2438_v42 }
  0xbe   :  { %2307 = vmatprep.subr.bf16.mxu1 %v2929_v23 }
  0xc1   :  { %2308 = vmatpush3.bf16.msra.mxu1 %v2439_v43 }
  0xc2   :  { %2309 = vmatprep.subr.bf16.mxu1 %v2929_v23 }
  0xc3   :  { %2290 = vmatmul.mubr.bf16.gmra.mxu1 %v2427_v8 }
  0xc4   :  { %2250 = vmatmul.mubr.bf16.gmra.mxu0 %v2411_v2  ;;  %2293 = vmatprep.mubr.bf16.mxu1 %v2430_v9 }
  0xc5   :  { %2253 = vmatprep.mubr.bf16.mxu0 %v2412_v3  ;;  %2310 = vmatpush3.bf16.msra.mxu1 %v2440_v44 }
  0xc6   :  { %2311 = vmatprep.subr.bf16.mxu1 %v2929_v23 }
  0xc9   :  { %2312 = vmatpush3.bf16.msra.mxu1 %v2441_v45 }
  0xca   :  { %2313 = vmatprep.subr.bf16.mxu1 %v2929_v23 }
  0xcb   :  { %2294 = vmatmul.mubr.bf16.gmra.mxu1 %v2431_v12 }
  0xcc   :  { %2254 = vmatmul.mubr.bf16.gmra.mxu0 %v2413_v6  ;;  %2297 = vmatprep.mubr.bf16.mxu1 %v2434_v13 }
  0xcd   :  { %2257 = vmatprep.mubr.bf16.mxu0 %v2414_v7  ;;  %2314 = vmatpush3.bf16.msra.mxu1 %v2442_v46 }
  0xce   :  { %2315 = vmatprep.subr.bf16.mxu1 %v2929_v23 }
  0xd1   :  { %2316 = vmatpush3.bf16.msra.mxu1 %v2443_v47 }
  0xd2   :  { %2317 = vmatprep.subr.bf16.mxu1 %v2929_v23 }
  0xd3   :  { %2298 = vmatmul.mubr.bf16.gmra.mxu1 %v2435_v16 }
  0xd4   :  { %2258 = vmatmul.mubr.bf16.gmra.mxu0 %v2415_v10  ;;  %2301 = vmatprep.mubr.bf16.mxu1 %v2436_v17 }
  0xd5   :  { %2261 = vmatprep.mubr.bf16.mxu0 %v2416_v11  ;;  %2318 = vmatpush3.bf16.msra.mxu1 %v2444_v48 }
  0xd6   :  { %2319 = vmatprep.subr.bf16.mxu1 %v2929_v23 }
  0xd9   :  { %2320 = vmatpush3.bf16.msra.mxu1 %v2445_v49 }
  0xdb   :  { %2302 = vmatmul.mubr.bf16.gmra.mxu1 %v2437_v20 }
  0xdc   :  { %2262 = vmatmul.mubr.bf16.gmra.mxu0 %v2417_v14  ;;  %2321 = vmatprep.mubr.msk.bf16.mxu1 %vm2931_vm1, %v2929_v23 }
  0xdd   :  { %2265 = vmatprep.mubr.bf16.mxu0 %v2418_v15 }
  0xe4   :  { %2266 = vmatmul.mubr.bf16.gmra.mxu0 %v2419_v18 }
  0xe5   :  { %2269 = vmatprep.mubr.bf16.mxu0 %v2420_v19 }
  0xec   :  { %2270 = vmatmul.mubr.bf16.gmra.mxu0 %v2421_v21 }
  0xed   :  { %2273 = vmatprep.mubr.bf16.mxu0 %v2424_v22  ;;  %v2106_v22 = vld [vmem:[#allocation12] ss:$0 sm:$0xff] }
  0xf4   :  { %2274 = vmatmul.mubr.bf16.gmra.mxu0 %v2425_v24 }
  0xf5   :  { %2277 = vmatprep.mubr.bf16.mxu0 %v2428_v25 }
  0xfc   :  { %2278 = vmatmul.mubr.bf16.gmra.mxu0 %v2429_v26 }
  0xfd   :  { %2281 = vmatprep.mubr.bf16.mxu0 %v2432_v27 }
 0x103   :  { %v184_v30 = vpop.xlane.xlu0 %183 }
 0x104   :  { %v190_v31 = vadd.f32 %v184_v30, %v178_v28  ;;  %2282 = vmatmul.mubr.bf16.gmra.mxu0 %v2433_v29 }
 0x106   :  { %193 = vst.msk [vmem:[#allocation3] sm:$0xff] %vm165_vm0, %v190_v31 }
 0x107   :  { %v189_v34 = vpop.xlane.xlu0 %188 }
 0x108   :  { %v191_v35 = vadd.f32 %v189_v34, %v179_v32 }
 0x10a   :  { %194 = vst.msk [vmem:[#allocation3 + $0x8] sm:$0xff] %vm165_vm0, %v191_v35 }
 0x10d   :  { %v1501_v36 = vld [vmem:[#allocation3] sm:$0xff] }
 0x10e   :  { %v1503_v37 = vadd.f32 1e-10, %v1501_v36 }
 0x110   :  { %2470 = vrcp.f32 %v1503_v37 }
 0x111   :  { %v1502_v38 = vld [vmem:[#allocation3 + $0x8] sm:$0xff] }
 0x112   :  { %v1504_v39 = vadd.f32 1e-10, %v1502_v38 }
 0x114   :  { %2472 = vrcp.f32 %v1504_v39 }
 0x11d   :  { %v2471_v40 = vpop.eup %2470 }
 0x11e   :  { %1513 = vperm.xlu1 %2364, %v2471_v40  }
 0x121   :  { %v2473_v41 = vpop.eup %2472 }
 0x122   :  { %1518 = vperm.xlu1 %2364, %v2473_v41  }
 0x154   :  { %v2148_v51 = vpop.f32.mrf.mxu0 }
 0x156   :  { %v2149_v52 = vpop.f32.mrf.mxu0 }
 0x157   :  { %v2150_v12 = vadd.f32 %v2149_v52, %v2148_v51 }
 0x158   :  { %v2151_v53 = vpop.f32.mrf.mxu0 }
 0x15a   :  { %v2152_v54 = vpop.f32.mrf.mxu0 }
 0x15b   :  { %v2170_v60 = vpop.f32.mrf.mxu1  ;;  %v2153_v17 = vadd.f32 %v2152_v54, %v2151_v53 }
 0x15d   :  { %v2171_v62 = vpop.f32.mrf.mxu1 }
 0x15e   :  { %v2172_v13 = vadd.f32 %v2171_v62, %v2170_v60 }
 0x15f   :  { %v2173_v1 = vpop.f32.mrf.mxu1 }
 0x160   :  { %v533_v19 = vadd.f32 %v2172_v13, %v2150_v12 }
 0x161   :  { %v2174_v4 = vpop.f32.mrf.mxu1 }
 0x162   :  { %v2175_v18 = vadd.f32 %v2174_v4, %v2173_v1 }
 0x164   :  { %v536_v28 = vadd.f32 %v2175_v18, %v2153_v17 }
 0x174   :  { %v3083_v55 = vpop.f32.mrf.mxu0 }
 0x176   :  { %v3085_v56 = vpop.f32.mrf.mxu0 }
 0x178   :  { %v3087_v57 = vpop.f32.mrf.mxu0 }
 0x17a   :  { %v3089_v58 = vpop.f32.mrf.mxu0 }
 0x17b   :  { %v3107_v6 = vpop.f32.mrf.mxu1 }
 0x17c   :  { %v3091_v59 = vpop.f32.mrf.mxu0 }
 0x17d   :  { %v3111_v8 = vpop.f32.mrf.mxu1  ;;  %v1154_v42 = vmax.f32 %v3083_v55, %v3091_v59 }
 0x17e   :  { %v3093_v61 = vpop.f32.mrf.mxu0 }
 0x17f   :  { %v3115_v10 = vpop.f32.mrf.mxu1  ;;  %v1152_v46 = vmax.f32 %v3085_v56, %v3093_v61 }
 0x180   :  { %v3095_v23 = vpop.f32.mrf.mxu0 }
 0x181   :  { %v3121_v15 = vpop.f32.mrf.mxu1  ;;  %v1155_v48 = vmax.f32 %v3087_v57, %v3095_v23 }
 0x182   :  { %v3097_v63 = vpop.f32.mrf.mxu0 }
 0x183   :  { %v3127_v21 = vpop.f32.mrf.mxu1  ;;  %v1153_v52 = vmax.f32 %v3089_v58, %v3097_v63 }
 0x184   :  { %v3099_v0 = vpop.f32.mrf.mxu0 }
 0x185   :  { %v3135_v30 = vpop.f32.mrf.mxu1  ;;  %v1158_v49 = vmax.f32 %v1154_v42, %v3099_v0 }
 0x186   :  { %v3101_v2 = vpop.f32.mrf.mxu0 }
 0x187   :  { %v3144_v39 = vpop.f32.mrf.mxu1  ;;  %v1156_v53 = vmax.f32 %v1152_v46, %v3101_v2 }
 0x188   :  { %v3103_v3 = vpop.f32.mrf.mxu0 }
 0x189   :  { %v3153_v45 = vpop.f32.mrf.mxu1  ;;  %v1159_v60 = vmax.f32 %v1155_v48, %v3103_v3 }
 0x18a   :  { %v3105_v5 = vpop.f32.mrf.mxu0 }
 0x18b   :  { %v3164_v51 = vpop.f32.mrf.mxu1  ;;  %v1157_v12 = vmax.f32 %v1153_v52, %v3105_v5 }
 0x18c   :  { %v3109_v7 = vpop.f32.mrf.mxu0  ;;  %3539 = vst [vmem:[#allocation43_spill] sm:$0xff] %v3164_v51 }
 0x18d   :  { %v1162_v62 = vmax.f32 %v1158_v49, %v3109_v7  ;;  %v3175_v4 = vpop.f32.mrf.mxu1 }
 0x18e   :  { %v3113_v9 = vpop.f32.mrf.mxu0 }
 0x18f   :  { %v1160_v13 = vmax.f32 %v1156_v53, %v3113_v9 }
 0x190   :  { %v3117_v11 = vpop.f32.mrf.mxu0 }
 0x192   :  { %v3119_v14 = vpop.f32.mrf.mxu0 }
 0x194   :  { %v3123_v16 = vpop.f32.mrf.mxu0 }
 0x195   :  { %3531 = vst [vmem:[#allocation35_spill] sm:$0xff] %v3123_v16 }
 0x196   :  { %v3125_v20 = vpop.f32.mrf.mxu0 }
 0x198   :  { %v3129_v26 = vpop.f32.mrf.mxu0 }
 0x199   :  { %v1514_v24 = vpop.permute.xlu1 %1513  ;;  %3532 = vst [vmem:[#allocation36_spill] sm:$0xff] %v3129_v26 }
 0x19a   :  { %v1521_v25 = vmul.f32 %v1514_v24, %v533_v19  ;;  %v3133_v29 = vpop.f32.mrf.mxu0  ;;  %v1163_v19 = vmax.f32 %v1159_v60, %v3117_v11 }
 0x19c   :  { %v3131_v27 = vadd.f32 %v2106_v22, %v1521_v25  ;;  %v3138_v35 = vpop.f32.mrf.mxu0 }
 0x19d   :  { %v1519_v31 = vpop.permute.xlu1 %1518  ;;  %3533 = vst [vmem:[#allocation37_spill] sm:$0xff] %v3138_v35 }
 0x19e   :  { %v1534_v32 = vmin.f32 %v3131_v27, 20.0  ;;  %v1522_v34 = vmul.f32 %v1519_v31, %v536_v28  ;;  %v3142_v38 = vpop.f32.mrf.mxu0  ;;  %v3185_v28 = vpop.f32.mrf.mxu1  ;;  %v1161_v31 = vmax.f32 %v1157_v12, %v3119_v14  ;;  %vm1532_vm4 = vcmp.gt.f32.partialorder %v3131_v27, 20.0 }
 0x19f   :  { %3534 = vst [vmem:[#allocation38_spill] sm:$0xff] %v3142_v38  ;;  %3544 = vst [vmem:[#allocation48_spill] sm:$0xff] %v3185_v28 }
 0x1a0   :  { %v1536_v36 = vmul.f32 1.442695, %v1534_v32  ;;  %v3140_v37 = vadd.f32 %v2106_v22, %v1522_v34  ;;  %v3147_v41 = vpop.f32.mrf.mxu0  ;;  %v1166_v22 = vmax.f32 %v1162_v62, %v3123_v16  ;;  %v1164_v32 = vmax.f32 %v1160_v13, %v3125_v20  ;;  %v3195_v48 = vpop.f32.mrf.mxu1 }
 0x1a1   :  { %3535 = vst [vmem:[#allocation39_spill] sm:$0xff] %v3147_v41  ;;  %v1165_v49 = vmax.f32 %v1161_v31, %v3133_v29 }
 0x1a2   :  { %2474 = vpow2.f32 %v1536_v36  ;;  %v1535_v40 = vmin.f32 %v3140_v37, 20.0  ;;  %v3151_v44 = vpop.f32.mrf.mxu0  ;;  %v1170_v42 = vmax.f32 %v1166_v22, %v3138_v35  ;;  %v1168_v52 = vmax.f32 %v1164_v32, %v3142_v38  ;;  %v3205_v13 = vpop.f32.mrf.mxu1 }
 0x1a3   :  { %3536 = vst [vmem:[#allocation40_spill] sm:$0xff] %v3151_v44  ;;  %3546 = vst [vmem:[#allocation50_spill] sm:$0xff] %v3205_v13  ;;  %vm1533_vm5 = vcmp.gt.f32.partialorder %v3140_v37, 20.0 }
 0x1a4   :  { %v1538_v43 = vmul.f32 1.442695, %v1535_v40  ;;  %v3157_v47 = vpop.f32.mrf.mxu0  ;;  %v1167_v40 = vmax.f32 %v1163_v19, %v3129_v26  ;;  %v1169_v19 = vmax.f32 %v1165_v49, %v3151_v44 }
 0x1a5   :  { %3537 = vst [vmem:[#allocation41_spill] sm:$0xff] %v3157_v47  ;;  %v1174_v62 = vmax.f32 %v1170_v42, %v3157_v47 }
 0x1a6   :  { %2476 = vpow2.f32 %v1538_v43  ;;  %v3162_v50 = vpop.f32.mrf.mxu0  ;;  %v1171_v60 = vmax.f32 %v1167_v40, %v3147_v41  ;;  %v3215_v40 = vpop.f32.mrf.mxu1 }
 0x1a7   :  { %3538 = vst [vmem:[#allocation42_spill] sm:$0xff] %v3162_v50  ;;  %v1172_v22 = vmax.f32 %v1168_v52, %v3162_v50  ;;  %3547 = vst [vmem:[#allocation51_spill] sm:$0xff] %v3215_v40 }
 0x1a8   :  { %v3169_v54 = vpop.f32.mrf.mxu0  ;;  %v3225_v38 = vpop.f32.mrf.mxu1 }
 0x1a9   :  { %3540 = vst [vmem:[#allocation44_spill] sm:$0xff] %v3169_v54  ;;  %v1175_v31 = vmax.f32 %v1171_v60, %v3169_v54  ;;  %3548 = vst [vmem:[#allocation52_spill] sm:$0xff] %v3225_v38 }
 0x1aa   :  { %v3173_v1 = vpop.f32.mrf.mxu0 }
 0x1ab   :  { %3541 = vst [vmem:[#allocation45_spill] sm:$0xff] %v3173_v1  ;;  %v1173_v42 = vmax.f32 %v1169_v19, %v3173_v1 }
 0x1ac   :  { %v3179_v17 = vpop.f32.mrf.mxu0 }
 0x1ad   :  { %3542 = vst [vmem:[#allocation46_spill] sm:$0xff] %v3179_v17  ;;  %v1178_v32 = vmax.f32 %v1174_v62, %v3179_v17 }
 0x1ae   :  { %v3183_v25 = vpop.f32.mrf.mxu0 }
 0x1af   :  { %v2475_v18 = vpop.eup %2474  ;;  %3543 = vst [vmem:[#allocation47_spill] sm:$0xff] %v3183_v25  ;;  %v1176_v47 = vmax.f32 %v1172_v22, %v3183_v25 }
 0x1b0   :  { %v1540_v24 = vadd.f32 1.0, %v2475_v18  ;;  %v3189_v34 = vpop.f32.mrf.mxu0  ;;  %v1546_v50 = vand.u32 2147483647, %v2475_v18 }
 0x1b1   :  { %3545 = vst [vmem:[#allocation49_spill] sm:$0xff] %v3189_v34  ;;  %v1179_v44 = vmax.f32 %v1175_v31, %v3189_v34 }
 0x1b2   :  { %2478 = vlog2.f32 %v1540_v24  ;;  %v3193_v46 = vpop.f32.mrf.mxu0  ;;  %v1543_v24 = vmul.f32 -0.5, %v2475_v18  ;;  %vm3231_vm2 = vcmp.lt.f32.partialorder %v1546_v50, 0.0004427343 }
 0x1b3   :  { %v2477_v36 = vpop.eup %2476  ;;  %v1177_v19 = vmax.f32 %v1173_v42, %v3193_v46 }
 0x1b4   :  { %v1549_v43 = vadd.f32 1.0, %v2477_v36  ;;  %v3199_v53 = vpop.f32.mrf.mxu0  ;;  %v1544_v41 = vadd.f32 1.0, %v1543_v24  ;;  %v1555_v26 = vand.u32 2147483647, %v2477_v36 }
 0x1b5   :  { %v1182_v60 = vmax.f32 %v1178_v32, %v3199_v53 }
 0x1b6   :  { %2480 = vlog2.f32 %v1549_v43  ;;  %v3203_v12 = vpop.f32.mrf.mxu0  ;;  %v1552_v43 = vmul.f32 -0.5, %v2477_v36  ;;  %v1545_v24 = vmul.f32 %v2475_v18, %v1544_v41  ;;  %vm1556_vm3 = vcmp.lt.f32.partialorder %v1555_v26, 0.0004427343 }
 0x1b7   :  { %v1180_v22 = vmax.f32 %v1176_v47, %v3203_v12  ;;  %v3241_v47 = vpop.f32.mrf.mxu1 }
 0x1b8   :  { %v3209_v33 = vpop.f32.mrf.mxu0  ;;  %v1553_v62 = vadd.f32 1.0, %v1552_v43 }
 0x1b9   :  { %v1183_v31 = vmax.f32 %v1179_v44, %v3209_v33 }
 0x1ba   :  { %v3213_v35 = vpop.f32.mrf.mxu0  ;;  %v1554_v34 = vmul.f32 %v2477_v36, %v1553_v62  ;;  %v3255_v62 = vpop.f32.mrf.mxu1 }
 0x1bb   :  { %v1181_v41 = vmax.f32 %v1177_v19, %v3213_v35  ;;  %3551 = vst [vmem:[#allocation53_spill] sm:$0xff] %v3255_v62 }
 0x1bc   :  { %v3219_v49 = vpop.f32.mrf.mxu0 }
 0x1bd   :  { %v1186_v32 = vmax.f32 %v1182_v60, %v3219_v49 }
 0x1be   :  { %v3223_v17 = vpop.f32.mrf.mxu0 }
 0x1bf   :  { %v2479_v52 = vpop.eup %2478  ;;  %v1184_v50 = vmax.f32 %v1180_v22, %v3223_v17 }
 0x1c0   :  { %v1542_v54 = vmul.f32 0.6931472, %v2479_v52  ;;  %v3229_v25 = vpop.f32.mrf.mxu0 }
 0x1c2   :  { %v1548_v43 = vsel %vm3231_vm2, %v1545_v24, %v1542_v54  ;;  %v3239_v42 = vpop.f32.mrf.mxu0 }
 0x1c3   :  { %v2481_v1 = vpop.eup %2480  ;;  %v1558_v16 = vsel %vm1532_vm4, %v3131_v27, %v1548_v43  ;;  %v1185_v19 = vmax.f32 %v1181_v41, %v3239_v42 }
 0x1c4   :  { %v1551_v52 = vmul.f32 0.6931472, %v2481_v1  ;;  %v3247_v18 = vpop.f32.mrf.mxu0  ;;  %v1187_v1 = vmax.f32 %v1183_v31, %v3229_v25 }
 0x1c5   :  { %v1190_v36 = vmax.f32 %v1186_v32, %v3247_v18  ;;  %v3552_v32 = vmov 0  }
 0x1c6   :  { %v1557_v44 = vsel %vm1556_vm3, %v1554_v34, %v1551_v52  ;;  %v3253_v60 = vpop.f32.mrf.mxu0  ;;  %v3268_v52 = vpop.f32.mrf.mxu1 }
 0x1c7   :  { %v1559_v54 = vsel %vm1533_vm5, %v3140_v37, %v1557_v44  ;;  %v1194_v22 = vmax.f32 %v1190_v36, %v3107_v6  ;;  %v1188_v34 = vmax.f32 %v1184_v50, %v3253_v60 }
 0x1c8   :  { %v1576_v26 = vpack.c.bf16 %v1559_v54, %v1558_v16  ;;  %v3260_v24 = vpop.f32.mrf.mxu0 }
 0x1c9   :  { %v1192_v27 = vmax.f32 %v1188_v34, %v3111_v8  ;;  %v1198_v37 = vmax.f32 %v1194_v22, %v3127_v21  ;;  %v1191_v31 = vmax.f32 %v1187_v1, %v3260_v24  ;;  %v3278_v22 = vpop.f32.mrf.mxu1 }
 0x1ca   :  { %2322 = vmatmul.mubr.bf16.vlgmr.msra.gmra.mxu1 %v1576_v26  ;;  %v3266_v43 = vpop.f32.mrf.mxu0 }
 0x1cb   :  { %1842 = vmatprep.mubr.bf16.mxu1 %v3552_v32  ;;  %v1202_v41 = vmax.f32 %v1198_v37, %v3164_v51  ;;  %v1195_v44 = vmax.f32 %v1191_v31, %v3115_v10  ;;  %v1196_v50 = vmax.f32 %v1192_v27, %v3135_v30  ;;  %v1189_v16 = vmax.f32 %v1185_v19, %v3266_v43  ;;  %v3292_v51 = vld [vmem:[#allocation4] sm:$0x1] }
 0x1cd   :  { %v1206_v54 = vmax.f32 %v1202_v41, %v3205_v13  ;;  %v1200_v36 = vmax.f32 %v1196_v50, %v3175_v4  ;;  %v1193_v1 = vmax.f32 %v1189_v16, %v3121_v15  ;;  %v1199_v26 = vmax.f32 %v1195_v44, %v3144_v39  ;;  %v3286_v41 = vpop.f32.mrf.mxu1 }
 0x1cf   :  { %v1204_v34 = vmax.f32 %v1200_v36, %v3215_v40  ;;  %v1197_v37 = vmax.f32 %v1193_v1, %v3153_v45  ;;  %v1203_v31 = vmax.f32 %v1199_v26, %v3185_v28  ;;  %v1210_v32 = vmax.f32 %v1206_v54, %v3255_v62 }
 0x1d0   :  { %v1229_v62 = vlaneseq }
 0x1d1   :  { %v1207_v27 = vmax.f32 %v1203_v31, %v3225_v38  ;;  %v1201_v19 = vmax.f32 %v1197_v37, %v3195_v48  ;;  %v1208_v44 = vmax.f32 %v1204_v34, %v3268_v52 }
 0x1d3   :  { %v1205_v50 = vmax.f32 %v1201_v19, %v3241_v47  ;;  %v1211_v16 = vmax.f32 %v1207_v27, %v3278_v22  ;;  %v3299_v27 = vshrl.u32 %v1229_v62, 7 }
 0x1d5   :  { %v1213_v13 = vmax.f32 %v1210_v32, %v1211_v16  ;;  %v1209_v36 = vmax.f32 %v1205_v50, %v3286_v41 }
 0x1d7   :  { %v1212_v1 = vmax.f32 %v1208_v44, %v1209_v36 }
 0x1d9   :  { %v1214_v40 = vmax.f32 %v1212_v1, %v1213_v13  ;;  %v3530_v13 = vsub.s32 0, %v3299_v27 }
 0x1db   :  { %v1215_v26 = vrot.slane %v1214_v40, 4 }
 0x1dd   :  { %v1216_v28 = vmax.f32 %v1214_v40, %v1215_v26 }
 0x1df   :  { %v1217_v31 = vrot.slane %v1216_v28, 2 }
 0x1e1   :  { %v1218_v38 = vmax.f32 %v1216_v28, %v1217_v31 }
 0x1e3   :  { %v1219_v37 = vrot.slane %v1218_v38, 1 }
 0x1e5   :  { %v1220_v54 = vmax.f32 %v1218_v38, %v1219_v37 }
 0x1e7   :  { %v3295_v19 = vmax.f32 %v3292_v51, %v1220_v54 }
 0x1e9   :  { %1497 = vst [vmem:[#allocation4] sm:$0x1] %v3295_v19  ;;  %v3306_v28 = vrot.slane %v3295_v19, %v3530_v13 }
 0x1eb   :  { %v1267_v38 = vsub.f32 %v3213_v35, %v3306_v28  ;;  %v1268_v40 = vsub.f32 %v3199_v53, %v3306_v28  ;;  %v1269_v32 = vsub.f32 %v3209_v33, %v3306_v28  ;;  %v1270_v62 = vsub.f32 %v3223_v17, %v3306_v28 }
 0x1ec   :  { %v1271_v50 = vsub.f32 %v3239_v42, %v3306_v28  ;;  %v1272_v44 = vsub.f32 %v3219_v49, %v3306_v28  ;;  %v1234_v37 = vsub.f32 %v3085_v56, %v3306_v28  ;;  %v1235_v54 = vsub.f32 %v3089_v58, %v3306_v28 }
 0x1ed   :  { %v1236_v13 = vsub.f32 %v3083_v55, %v3306_v28  ;;  %v1237_v36 = vsub.f32 %v3087_v57, %v3306_v28  ;;  %v1238_v26 = vsub.f32 %v3093_v61, %v3306_v28  ;;  %v1239_v31 = vsub.f32 %v3097_v63, %v3306_v28 }
 0x1ee   :  { %v1298_v34 = vmul.f32 1.442695, %v1234_v37  ;;  %v1300_v1 = vmul.f32 1.442695, %v1235_v54  ;;  %v1240_v58 = vsub.f32 %v3091_v59, %v3306_v28  ;;  %v1241_v37 = vsub.f32 %v3095_v23, %v3306_v28 }
 0x1ef   :  { %v1302_v16 = vmul.f32 1.442695, %v1236_v13  ;;  %v1304_v56 = vmul.f32 1.442695, %v1237_v36  ;;  %v1306_v55 = vmul.f32 1.442695, %v1238_v26  ;;  %v1242_v61 = vsub.f32 %v3101_v2, %v3306_v28 }
 0x1f0   :  { %2482 = vpow2.f32 %v1298_v34  ;;  %v1308_v57 = vmul.f32 1.442695, %v1239_v31  ;;  %v1310_v34 = vmul.f32 1.442695, %v1240_v58  ;;  %v1243_v63 = vsub.f32 %v3105_v5, %v3306_v28  ;;  %v1966_v58 = vld [vmem:[#allocation4] sm:$0x1] }
 0x1f1   :  { %2484 = vpow2.f32 %v1300_v1  ;;  %v1312_v13 = vmul.f32 1.442695, %v1241_v37  ;;  %v1244_v59 = vsub.f32 %v3099_v0, %v3306_v28  ;;  %v1245_v23 = vsub.f32 %v3103_v3, %v3306_v28  ;;  %1967 = vst [vmem:[#allocation24] sm:$0x1] %v1966_v58 }
 0x1f2   :  { %2486 = vpow2.f32 %v1302_v16  ;;  %v1314_v16 = vmul.f32 1.442695, %v1242_v61  ;;  %v1316_v1 = vmul.f32 1.442695, %v1243_v63  ;;  %v1246_v2 = vsub.f32 %v3113_v9, %v3306_v28 }
 0x1f3   :  { %2488 = vpow2.f32 %v1304_v56  ;;  %v1318_v31 = vmul.f32 1.442695, %v1244_v59  ;;  %v1247_v54 = vsub.f32 %v3119_v14, %v3306_v28  ;;  %v1320_v0 = vmul.f32 1.442695, %v1245_v23 }
 0x1f4   :  { %2490 = vpow2.f32 %v1306_v55  ;;  %v1248_v3 = vsub.f32 %v3109_v7, %v3306_v28  ;;  %v1322_v37 = vmul.f32 1.442695, %v1246_v2  ;;  %v1249_v9 = vsub.f32 %v3117_v11, %v3306_v28  ;;  %v3553_v11 = vld [vmem:[#allocation35_spill] sm:$0xff] }
 0x1f5   :  { %2492 = vpow2.f32 %v1308_v57  ;;  %v1251_v7 = vsub.f32 %v3133_v29, %v3306_v28  ;;  %v1252_v2 = vsub.f32 %v3553_v11, %v3306_v28  ;;  %v3555_v29 = vld [vmem:[#allocation38_spill] sm:$0xff]  ;;  %v1374_v33 = vmul.f32 1.442695, %v1272_v44 }
 0x1f6   :  { %2494 = vpow2.f32 %v1310_v34  ;;  %v1324_v34 = vmul.f32 1.442695, %v1247_v54  ;;  %v1326_v59 = vmul.f32 1.442695, %v1248_v3  ;;  %v1328_v23 = vmul.f32 1.442695, %v1249_v9 }
 0x1f7   :  { %2496 = vpow2.f32 %v1312_v13  ;;  %v1250_v13 = vsub.f32 %v3125_v20, %v3306_v28  ;;  %v3554_v20 = vld [vmem:[#allocation36_spill] sm:$0xff]  ;;  %v1254_v3 = vsub.f32 %v3555_v29, %v3306_v28  ;;  %v3560_v29 = vld [vmem:[#allocation45_spill] sm:$0xff]  ;;  %v3566_v17 = vsub.f32 %v3229_v25, %v3306_v28 }
 0x1f8   :  { %2498 = vpow2.f32 %v1314_v16  ;;  %v3556_v9 = vld [vmem:[#allocation40_spill] sm:$0xff]  ;;  %v3567_v42 = vsub.f32 %v3253_v60, %v3306_v28  ;;  %v3568_v49 = vsub.f32 %v3266_v43, %v3306_v28  ;;  %v1278_v25 = vsub.f32 %v3111_v8, %v3306_v28 }
 0x1f9   :  { %2500 = vpow2.f32 %v1316_v1  ;;  %v3570_v43 = vsub.f32 %v3260_v24, %v3306_v28  ;;  %v1280_v8 = vsub.f32 %v3107_v6, %v3306_v28  ;;  %v1282_v24 = vsub.f32 %v3135_v30, %v3306_v28 }
 0x1fa   :  { %2502 = vpow2.f32 %v1318_v31  ;;  %v1330_v31 = vmul.f32 1.442695, %v1250_v13  ;;  %v1380_v44 = vmul.f32 1.442695, %v3568_v49  ;;  %v1283_v6 = vsub.f32 %v3153_v45, %v3306_v28 }
 0x1fb   :  { %2504 = vpow2.f32 %v1320_v0  ;;  %v1253_v0 = vsub.f32 %v3554_v20, %v3306_v28  ;;  %v3559_v20 = vld [vmem:[#allocation42_spill] sm:$0xff]  ;;  %v1285_v30 = vsub.f32 %v3144_v39, %v3306_v28  ;;  %v1286_v45 = vsub.f32 %v3175_v4, %v3306_v28  ;;  %v3571_v39 = vld [vmem:[#allocation43_spill] sm:$0xff]  ;;  %v3572_v4 = vld [vmem:[#allocation48_spill] sm:$0xff] }
 0x1fc   :  { %2506 = vpow2.f32 %v1322_v37  ;;  %v1334_v37 = vmul.f32 1.442695, %v1252_v2 }
 0x1fd   :  { %v2483_v36 = vpop.eup %2482  ;;  %2508 = vpow2.f32 %v1324_v34  ;;  %v1255_v34 = vsub.f32 %v3556_v9, %v3306_v28 }
 0x1fe   :  { %v2485_v26 = vpop.eup %2484  ;;  %2510 = vpow2.f32 %v1326_v59  ;;  %v3557_v59 = vld [vmem:[#allocation37_spill] sm:$0xff] }
 0x1ff   :  { %v2487_v5 = vpop.eup %2486  ;;  %v1426_v56 = vadd.f32 %v2485_v26, %v2483_v36  ;;  %2512 = vpow2.f32 %v1328_v23  ;;  %v1340_v11 = vmul.f32 1.442695, %v1255_v34  ;;  %v2449_v34 = vld [vmem:[#allocation17 + $0x60] ss:$8 sps:$4 sm:$0xff]  }
 0x200   :  { %v2489_v55 = vpop.eup %2488  ;;  %2514 = vpow2.f32 %v1330_v31  ;;  %v2448_v31 = vld [vmem:[#allocation17 + $0x74] ss:$8 sps:$4 sm:$0xff]  }
 0x201   :  { %v1427_v57 = vadd.f32 %v2487_v5, %v1426_v56  ;;  %v2491_v61 = vpop.eup %2490  ;;  %v1332_v56 = vmul.f32 1.442695, %v1251_v7  ;;  %1810 = vmatprep.subr.bf16.mxu1 %v2448_v31  ;;  %v3563_v31 = vld [vmem:[#allocation47_spill] sm:$0xff] }
 0x202   :  { %v2493_v14 = vpop.eup %2492 }
 0x203   :  { %v1428_v63 = vadd.f32 %v2489_v55, %v1427_v57  ;;  %v2495_v36 = vpop.eup %2494  ;;  %2516 = vpow2.f32 %v1332_v56 }
 0x204   :  { %v2497_v26 = vpop.eup %2496  ;;  %2518 = vpow2.f32 %v1334_v37 }
 0x205   :  { %v1429_v16 = vadd.f32 %v2491_v61, %v1428_v63  ;;  %v2499_v54 = vpop.eup %2498  ;;  %v1336_v63 = vmul.f32 1.442695, %v1253_v0  ;;  %v1258_v0 = vsub.f32 %v3559_v20, %v3306_v28 }
 0x206   :  { %v2501_v55 = vpop.eup %2500 }
 0x207   :  { %v1430_v1 = vadd.f32 %v2493_v14, %v1429_v16  ;;  %v2503_v61 = vpop.eup %2502  ;;  %v1256_v16 = vsub.f32 %v3557_v59, %v3306_v28  ;;  %2520 = vpow2.f32 %v1336_v63  ;;  %v3561_v63 = vld [vmem:[#allocation41_spill] sm:$0xff] }
 0x208   :  { %v2505_v13 = vpop.eup %2504 }
 0x209   :  { %v1431_v5 = vadd.f32 %v2495_v36, %v1430_v1  ;;  %v1338_v36 = vmul.f32 1.442695, %v1254_v3  ;;  %v2507_v23 = vpop.eup %2506  ;;  %v3558_v1 = vld [vmem:[#allocation39_spill] sm:$0xff]  ;;  %v1342_v56 = vmul.f32 1.442695, %v1256_v16  ;;  %v1259_v3 = vsub.f32 %v3560_v29, %v3306_v28 }
 0x20a   :  { %v2457_v29 = vld [vmem:[#allocation17 + $0x44] ss:$8 sps:$4 sm:$0xff]  }
 0x20b   :  { %v1432_v58 = vadd.f32 %v2497_v26, %v1431_v5  ;;  %v1257_v26 = vsub.f32 %v3558_v1, %v3306_v28  ;;  %v2509_v5 = vpop.eup %2508  ;;  %2522 = vpow2.f32 %v1338_v36  ;;  %v3562_v36 = vld [vmem:[#allocation44_spill] sm:$0xff] }
 0x20c   :  { %2524 = vpow2.f32 %v1340_v11 }
 0x20d   :  { %v1433_v57 = vadd.f32 %v2499_v54, %v1432_v58  ;;  %v2446_v54 = vld [vmem:[#allocation17 + $0x70] ss:$8 sps:$4 sm:$0xff]   ;;  %v1344_v37 = vmul.f32 1.442695, %v1257_v26  ;;  %2526 = vpow2.f32 %v1342_v56  ;;  %v2454_v26 = vld [vmem:[#allocation17 + $0x54] ss:$8 sps:$4 sm:$0xff]   ;;  %v1263_v56 = vsub.f32 %v3193_v46, %v3306_v28 }
 0x20e   :  { %1811 = vmatpush1.bf16.msra.mxu1 %v2446_v54 }
 0x20f   :  { %v1434_v14 = vadd.f32 %v2501_v55, %v1433_v57  ;;  %v2511_v55 = vpop.eup %2510  ;;  %2528 = vpow2.f32 %v1344_v37  ;;  %v2455_v37 = vld [vmem:[#allocation17 + $0x40] ss:$8 sps:$4 sm:$0xff]   ;;  %v1356_v46 = vmul.f32 1.442695, %v1263_v56 }
 0x210   :  { %v2513_v9 = vpop.eup %2512 }
 0x211   :  { %v1435_v7 = vadd.f32 %v2503_v61, %v1434_v14  ;;  %v2451_v61 = vld [vmem:[#allocation17 + $0x64] ss:$8 sps:$4 sm:$0xff]   ;;  %v1260_v14 = vsub.f32 %v3561_v63, %v3306_v28  ;;  %v2515_v16 = vpop.eup %2514 }
 0x212   :  { %1812 = vmatprep.subr.bf16.mxu1 %v2451_v61  ;;  %v2517_v11 = vpop.eup %2516 }
 0x213   :  { %v1436_v2 = vadd.f32 %v2505_v13, %v1435_v7  ;;  %v1346_v13 = vmul.f32 1.442695, %v1258_v0  ;;  %1813 = vmatpush1.bf16.msra.mxu1 %v2449_v34  ;;  %v1261_v7 = vsub.f32 %v3562_v36, %v3306_v28  ;;  %v1350_v54 = vmul.f32 1.442695, %v1260_v14  ;;  %v2519_v0 = vpop.eup %2518  ;;  %v3565_v14 = vld [vmem:[#allocation49_spill] sm:$0xff] }
 0x214   :  { %1814 = vmatprep.subr.bf16.mxu1 %v2454_v26  ;;  %v2460_v36 = vld [vmem:[#allocation17 + $0x34] ss:$8 sps:$4 sm:$0xff]  }
 0x215   :  { %v1437_v58 = vadd.f32 %v2507_v23, %v1436_v2  ;;  %v1348_v23 = vmul.f32 1.442695, %v1259_v3  ;;  %v2452_v2 = vld [vmem:[#allocation17 + $0x50] ss:$8 sps:$4 sm:$0xff]   ;;  %2530 = vpow2.f32 %v1346_v13  ;;  %v2521_v3 = vpop.eup %2520  ;;  %v1265_v13 = vsub.f32 %v3565_v14, %v3306_v28 }
 0x216   :  { %v1368_v14 = vmul.f32 1.442695, %v1269_v32 }
 0x217   :  { %v1438_v57 = vadd.f32 %v2509_v5, %v1437_v58  ;;  %v1262_v5 = vsub.f32 %v3563_v31, %v3306_v28  ;;  %1815 = vmatpush1.bf16.msra.mxu1 %v2452_v2  ;;  %2532 = vpow2.f32 %v1348_v23  ;;  %v1352_v58 = vmul.f32 1.442695, %v1261_v7  ;;  %v2463_v23 = vld [vmem:[#allocation17 + $0x24] ss:$8 sps:$4 sm:$0xff]   ;;  %v2461_v31 = vld [vmem:[#allocation17 + $0x20] ss:$8 sps:$4 sm:$0xff]  }
 0x218   :  { %2534 = vpow2.f32 %v1350_v54  ;;  %1816 = vmatprep.subr.bf16.mxu1 %v2457_v29  ;;  %v2523_v63 = vpop.eup %2522  ;;  %v2464_v29 = vld [vmem:[#allocation17 + $0x10] ss:$8 sps:$4 sm:$0xff]  }
 0x219   :  { %v1439_v59 = vadd.f32 %v2511_v55, %v1438_v57  ;;  %v3564_v57 = vld [vmem:[#allocation46_spill] sm:$0xff]  ;;  %2536 = vpow2.f32 %v1352_v58  ;;  %v2525_v7 = vpop.eup %2524 }
 0x21a   :  { %v1264_v61 = vsub.f32 %v3564_v57, %v3306_v28  ;;  %v2527_v2 = vpop.eup %2526 }
 0x21b   :  { %v1440_v1 = vadd.f32 %v2513_v9, %v1439_v59  ;;  %v1354_v9 = vmul.f32 1.442695, %v1262_v5  ;;  %1817 = vmatpush1.bf16.msra.mxu1 %v2455_v37  ;;  %v1360_v5 = vmul.f32 1.442695, %v1265_v13  ;;  %v2469_v37 = vld [vmem:[#allocation17 + $0x4] ss:$8 sps:$4 sm:$0xff]  }
 0x21c   :  { %v1358_v26 = vmul.f32 1.442695, %v1264_v61  ;;  %1818 = vmatprep.subr.bf16.mxu1 %v2460_v36  ;;  %v1366_v61 = vmul.f32 1.442695, %v1268_v40  ;;  %v1370_v13 = vmul.f32 1.442695, %v1270_v62 }
 0x21d   :  { %v1441_v20 = vadd.f32 %v2515_v16, %v1440_v1  ;;  %v2458_v16 = vld [vmem:[#allocation17 + $0x30] ss:$8 sps:$4 sm:$0xff]   ;;  %v1266_v1 = vsub.f32 %v3203_v12, %v3306_v28  ;;  %2538 = vpow2.f32 %v1354_v9  ;;  %v1364_v12 = vmul.f32 1.442695, %v1267_v38 }
 0x21e   :  { %2540 = vpow2.f32 %v1356_v46  ;;  %v1372_v40 = vmul.f32 1.442695, %v1271_v50  ;;  %v1376_v62 = vmul.f32 1.442695, %v3566_v17  ;;  %v1378_v50 = vmul.f32 1.442695, %v3567_v42 }
 0x21f   :  { %v1442_v55 = vadd.f32 %v2517_v11, %v1441_v20  ;;  %1819 = vmatpush1.bf16.msra.mxu1 %v2458_v16  ;;  %v2466_v20 = vld [vmem:[#allocation17 + $0x14] ss:$8 sps:$4 sm:$0xff]   ;;  %2542 = vpow2.f32 %v1358_v26  ;;  %v1362_v56 = vmul.f32 1.442695, %v1266_v1 }
 0x220   :  { %1820 = vmatprep.subr.bf16.mxu1 %v2463_v23  ;;  %2544 = vpow2.f32 %v1360_v5 }
 0x221   :  { %v1443_v34 = vadd.f32 %v2519_v0, %v1442_v55  ;;  %v2529_v0 = vpop.eup %2528  ;;  %2546 = vpow2.f32 %v1362_v56 }
 0x222   :  { %v2531_v55 = vpop.eup %2530  ;;  %2548 = vpow2.f32 %v1364_v12  ;;  %v1281_v12 = vsub.f32 %v3115_v10, %v3306_v28  ;;  %v1284_v10 = vsub.f32 %v3127_v21, %v3306_v28  ;;  %v1287_v21 = vsub.f32 %v3195_v48, %v3306_v28  ;;  %v3573_v48 = vld [vmem:[#allocation51_spill] sm:$0xff] }
 0x223   :  { %v1444_v59 = vadd.f32 %v2521_v3, %v1443_v34  ;;  %1821 = vmatpush1.bf16.msra.mxu1 %v2461_v31  ;;  %2550 = vpow2.f32 %v1366_v61  ;;  %v3569_v31 = vsub.f32 %v3247_v18, %v3306_v28 }
 0x224   :  { %1822 = vmatprep.subr.bf16.mxu1 %v2466_v20  ;;  %v2533_v57 = vpop.eup %2532  ;;  %2552 = vpow2.f32 %v1368_v14  ;;  %v1279_v20 = vsub.f32 %v3121_v15, %v3306_v28 }
 0x225   :  { %v1445_v11 = vadd.f32 %v2523_v63, %v1444_v59  ;;  %v2535_v34 = vpop.eup %2534  ;;  %v2467_v63 = vld [vmem:[#allocation17] ss:$8 sps:$4 sm:$0xff]   ;;  %2554 = vpow2.f32 %v1370_v13  ;;  %v1382_v5 = vmul.f32 1.442695, %v3569_v31  ;;  %v1291_v31 = vsub.f32 %v3241_v47, %v3306_v28 }
 0x226   :  { %v2537_v38 = vpop.eup %2536  ;;  %2556 = vpow2.f32 %v1372_v40  ;;  %v1294_v47 = vsub.f32 %v3268_v52, %v3306_v28  ;;  %v1297_v52 = vsub.f32 %v3278_v22, %v3306_v28 }
 0x227   :  { %v1446_v54 = vadd.f32 %v2525_v7, %v1445_v11  ;;  %1823 = vmatpush1.bf16.msra.mxu1 %v2464_v29  ;;  %2558 = vpow2.f32 %v1374_v33 }
 0x228   :  { %1824 = vmatprep.subr.bf16.mxu1 %v2469_v37  ;;  %2560 = vpow2.f32 %v1376_v62  ;;  %v1288_v62 = vsub.f32 %v3571_v39, %v3306_v28 }
 0x229   :  { %v1447_v58 = vadd.f32 %v2527_v2, %v1446_v54  ;;  %2562 = vpow2.f32 %v1378_v50  ;;  %v1289_v50 = vsub.f32 %v3572_v4, %v3306_v28  ;;  %v2107_v4 = vld [vmem:[#allocation15] ss:$0 sm:$0xff] }
 0x22a   :  { %v2539_v53 = vpop.eup %2538  ;;  %2564 = vpow2.f32 %v1380_v44  ;;  %v1290_v44 = vsub.f32 %v3573_v48, %v3306_v28 }
 0x22b   :  { %v1448_v3 = vadd.f32 %v2529_v0, %v1447_v58  ;;  %1825 = vmatpush1.bf16.msra.mxu1 %v2467_v63  ;;  %v2541_v16 = vpop.eup %2540  ;;  %v1384_v0 = vmul.f32 1.442695, %v3570_v43  ;;  %2566 = vpow2.f32 %v1382_v5  ;;  %v1408_v5 = vmul.f32 1.442695, %v1289_v50 }
 0x22c   :  { %v2543_v36 = vpop.eup %2542 }
 0x22d   :  { %v1449_v9 = vadd.f32 %v2531_v55, %v1448_v3  ;;  %v2545_v23 = vpop.eup %2544  ;;  %v1386_v55 = vmul.f32 1.442695, %v1278_v25  ;;  %2568 = vpow2.f32 %v1384_v0  ;;  %v1388_v3 = vmul.f32 1.442695, %v1279_v20  ;;  %v3574_v20 = vld [vmem:[#allocation50_spill] sm:$0xff] }
 0x22e   :  { %v2547_v26 = vpop.eup %2546  ;;  %v1292_v43 = vsub.f32 %v3574_v20, %v3306_v28  ;;  %v1410_v0 = vmul.f32 1.442695, %v1290_v44 }
 0x22f   :  { %v1450_v35 = vadd.f32 %v2533_v57, %v1449_v9  ;;  %v2549_v2 = vpop.eup %2548  ;;  %2570 = vpow2.f32 %v1386_v55  ;;  %v1390_v57 = vmul.f32 1.442695, %v1280_v8  ;;  %v3575_v8 = vld [vmem:[#allocation52_spill] sm:$0xff] }
 0x230   :  { %v2551_v60 = vpop.eup %2550  ;;  %2572 = vpow2.f32 %v1388_v3  ;;  %v1293_v55 = vsub.f32 %v3575_v8, %v3306_v28  ;;  %v1414_v3 = vmul.f32 1.442695, %v1292_v43  ;;  %v1223_v8 = vld [vmem:[#allocation5] sm:$0x1] }
 0x231   :  { %v1451_v46 = vadd.f32 %v2535_v34, %v1450_v35  ;;  %v2553_v58 = vpop.eup %2552  ;;  %v1392_v34 = vmul.f32 1.442695, %v1281_v12  ;;  %2574 = vpow2.f32 %v1390_v57  ;;  %v1394_v35 = vmul.f32 1.442695, %v1282_v24 }
 0x232   :  { %v2555_v18 = vpop.eup %2554  ;;  %v1295_v24 = vsub.f32 %v3286_v41, %v3306_v28  ;;  %v1416_v57 = vmul.f32 1.442695, %v1293_v55 }
 0x233   :  { %v1452_v59 = vadd.f32 %v2537_v38, %v1451_v46  ;;  %v2557_v37 = vpop.eup %2556  ;;  %2576 = vpow2.f32 %v1392_v34  ;;  %v1396_v46 = vmul.f32 1.442695, %v1283_v6  ;;  %v3576_v6 = vld [vmem:[#allocation53_spill] sm:$0xff] }
 0x234   :  { %v2559_v9 = vpop.eup %2558  ;;  %2578 = vpow2.f32 %v1394_v35  ;;  %v1296_v34 = vsub.f32 %v3576_v6, %v3306_v28  ;;  %v1420_v35 = vmul.f32 1.442695, %v1295_v24 }
 0x235   :  { %v1453_v32 = vadd.f32 %v2539_v53, %v1452_v59  ;;  %v2561_v14 = vpop.eup %2560  ;;  %v1398_v59 = vmul.f32 1.442695, %v1284_v10  ;;  %2580 = vpow2.f32 %v1396_v46 }
 0x236   :  { %v2563_v13 = vpop.eup %2562  ;;  %v1422_v41 = vmul.f32 1.442695, %v1296_v34 }
 0x237   :  { %v1454_v7 = vadd.f32 %v2541_v16, %v1453_v32  ;;  %v2565_v40 = vpop.eup %2564  ;;  %v1400_v32 = vmul.f32 1.442695, %v1285_v30  ;;  %2582 = vpow2.f32 %v1398_v59 }
 0x238   :  { %v2567_v33 = vpop.eup %2566 }
 0x239   :  { %v1455_v1 = vadd.f32 %v2543_v36, %v1454_v7  ;;  %v1402_v7 = vmul.f32 1.442695, %v1286_v45  ;;  %2584 = vpow2.f32 %v1400_v32 }
 0x23a   :  { %v2569_v17 = vpop.eup %2568 }
 0x23b   :  { %v1456_v11 = vadd.f32 %v2545_v23, %v1455_v1  ;;  %v1404_v1 = vmul.f32 1.442695, %v1287_v21  ;;  %2586 = vpow2.f32 %v1402_v7 }
 0x23c   :  { %v2571_v42 = vpop.eup %2570 }
 0x23d   :  { %v1457_v54 = vadd.f32 %v2547_v26, %v1456_v11  ;;  %v2573_v49 = vpop.eup %2572  ;;  %v1406_v11 = vmul.f32 1.442695, %v1288_v62  ;;  %2588 = vpow2.f32 %v1404_v1 }
 0x23e   :  { %v2575_v25 = vpop.eup %2574 }
 0x23f   :  { %v1458_v56 = vadd.f32 %v2549_v2, %v1457_v54  ;;  %2590 = vpow2.f32 %v1406_v11 }
 0x240   :  { %2592 = vpow2.f32 %v1408_v5 }
 0x241   :  { %v1459_v29 = vadd.f32 %v2551_v60, %v1458_v56  ;;  %v2577_v60 = vpop.eup %2576  ;;  %2594 = vpow2.f32 %v1410_v0 }
 0x243   :  { %v1460_v15 = vadd.f32 %v2553_v58, %v1459_v29  ;;  %v2579_v58 = vpop.eup %2578  ;;  %v1412_v29 = vmul.f32 1.442695, %v1291_v31 }
 0x244   :  { %v2581_v12 = vpop.eup %2580 }
 0x245   :  { %v1461_v61 = vadd.f32 %v2555_v18, %v1460_v15  ;;  %2596 = vpow2.f32 %v1412_v29 }
 0x246   :  { %2598 = vpow2.f32 %v1414_v3 }
 0x247   :  { %v1462_v63 = vadd.f32 %v2557_v37, %v1461_v61  ;;  %v2583_v37 = vpop.eup %2582  ;;  %2600 = vpow2.f32 %v1416_v57 }
 0x249   :  { %v1463_v38 = vadd.f32 %v2559_v9, %v1462_v63  ;;  %v2585_v9 = vpop.eup %2584  ;;  %v1418_v63 = vmul.f32 1.442695, %v1294_v47 }
 0x24a   :  { %v2587_v10 = vpop.eup %2586 }
 0x24b   :  { %v1464_v53 = vadd.f32 %v2561_v14, %v1463_v38  ;;  %2602 = vpow2.f32 %v1418_v63 }
 0x24c   :  { %2604 = vpow2.f32 %v1420_v35 }
 0x24d   :  { %v1465_v16 = vadd.f32 %v2563_v13, %v1464_v53  ;;  %v2589_v13 = vpop.eup %2588  ;;  %v1424_v53 = vmul.f32 1.442695, %v1297_v52  ;;  %2606 = vpow2.f32 %v1422_v41 }
 0x24e   :  { %v2591_v46 = vpop.eup %2590 }
 0x24f   :  { %v1466_v36 = vadd.f32 %v2565_v40, %v1465_v16  ;;  %v2593_v45 = vpop.eup %2592  ;;  %2608 = vpow2.f32 %v1424_v53 }
 0x250   :  { %v2595_v16 = vpop.eup %2594 }
 0x251   :  { %v1467_v23 = vadd.f32 %v2567_v33, %v1466_v36 }
 0x252   :  { %v2597_v21 = vpop.eup %2596 }
 0x253   :  { %v1468_v26 = vadd.f32 %v2569_v17, %v1467_v23  ;;  %v2599_v22 = vpop.eup %2598  ;;  %v3577_v17 = vsub.f32 %v3292_v51, %v3295_v19 }
 0x254   :  { %v2601_v36 = vpop.eup %2600 }
 0x255   :  { %v1469_v2 = vadd.f32 %v2571_v42, %v1468_v26  ;;  %v1225_v39 = vmul.f32 1.442695, %v3577_v17 }
 0x257   :  { %v1470_v54 = vadd.f32 %v2573_v49, %v1469_v2  ;;  %2610 = vpow2.f32 %v1225_v39 }
 0x258   :  { %v2603_v7 = vpop.eup %2602 }
 0x259   :  { %v1471_v56 = vadd.f32 %v2575_v25, %v1470_v54  ;;  %v2605_v42 = vpop.eup %2604 }
 0x25a   :  { %v2607_v1 = vpop.eup %2606 }
 0x25b   :  { %v1472_v18 = vadd.f32 %v2577_v60, %v1471_v56 }
 0x25c   :  { %v2609_v44 = vpop.eup %2608 }
 0x25d   :  { %v1473_v15 = vadd.f32 %v2579_v58, %v1472_v18 }
 0x25f   :  { %v1474_v61 = vadd.f32 %v2581_v12, %v1473_v15 }
 0x261   :  { %v1475_v14 = vadd.f32 %v2583_v37, %v1474_v61 }
 0x263   :  { %v1476_v38 = vadd.f32 %v2585_v9, %v1475_v14 }
 0x264   :  { %v2611_v58 = vpop.eup %2610 }
 0x265   :  { %v1477_v30 = vadd.f32 %v2587_v10, %v1476_v38  ;;  %v1227_v29 = vmul.f32 %v2611_v58, %v1223_v8 }
 0x267   :  { %v1478_v40 = vadd.f32 %v2589_v13, %v1477_v30 }
 0x269   :  { %v1479_v59 = vadd.f32 %v2591_v46, %v1478_v40 }
 0x26b   :  { %v1480_v33 = vadd.f32 %v2593_v45, %v1479_v59 }
 0x26d   :  { %v1481_v32 = vadd.f32 %v2595_v16, %v1480_v33  ;;  %v1718_v16 = vld [vmem:[#allocation18] sm:$0x3]  ;;  %v1726_v33 = vsub.s32 1, %v3299_v27 }
 0x26f   :  { %v1482_v28 = vadd.f32 %v2597_v21, %v1481_v32  ;;  %v3578_v32 = vsub.s32 0, %v3299_v27 }
 0x271   :  { %v1483_v62 = vadd.f32 %v2599_v22, %v1482_v28  ;;  %v1723_v22 = vrot.slane %v1718_v16, %v3578_v32 }
 0x273   :  { %v1484_v23 = vadd.f32 %v2601_v36, %v1483_v62  ;;  %v1727_v36 = vrot.slane %v1718_v16, %v1726_v33  ;;  %v1909_v16 = vld [vmem:[%s3505_s9 + $0x8] sm:$0xff] }
 0x275   :  { %v1485_v50 = vadd.f32 %v2603_v7, %v1484_v23 }
 0x277   :  { %v1486_v49 = vadd.f32 %v2605_v42, %v1485_v50 }
 0x279   :  { %v1487_v2 = vadd.f32 %v2607_v1, %v1486_v49 }
 0x27b   :  { %v1488_v5 = vadd.f32 %v2609_v44, %v1487_v2 }
 0x27d   :  { %v1489_v60 = vrot.slane %v1488_v5, 4 }
 0x27f   :  { %v1490_v43 = vadd.f32 %v1489_v60, %v1488_v5 }
 0x281   :  { %v1491_v56 = vrot.slane %v1490_v43, 2 }
 0x283   :  { %v1492_v55 = vadd.f32 %v1491_v56, %v1490_v43 }
 0x285   :  { %v1493_v18 = vrot.slane %v1492_v55, 1 }
 0x287   :  { %v1494_v12 = vadd.f32 %v1493_v18, %v1492_v55 }
 0x289   :  { %v1495_v47 = vadd.f32 %v1494_v12, %v1227_v29 }
 0x28a   :  { %v1666_v26 = vpop.f32.mrf.mxu1 }
 0x28b   :  { %v1667_v48 = vadd.f32 %v2107_v4, %v1666_v26  ;;  %1496 = vst [vmem:[#allocation5] sm:$0x1] %v1495_v47 }
 0x28c   :  { %v2323_v11 = vpop.f32.mrf.mxu1 }
 0x28d   :  { %v1675_v25 = vmin.f32 %v1667_v48, 20.0  ;;  %vm1673_vm8 = vcmp.gt.f32.partialorder %v1667_v48, 20.0 }
 0x28e   :  { %v1669_v31 = vpop.f32.mrf.mxu1 }
 0x28f   :  { %v1677_v54 = vmul.f32 1.442695, %v1675_v25  ;;  %v1670_v51 = vadd.f32 %v2107_v4, %v1669_v31 }
 0x290   :  { %v2324_v19 = vpop.f32.mrf.mxu1 }
 0x291   :  { %2612 = vpow2.f32 %v1677_v54  ;;  %v1676_v20 = vmin.f32 %v1670_v51, 20.0  ;;  %vm1674_vm9 = vcmp.gt.f32.partialorder %v1670_v51, 20.0 }
 0x292   :  { %v1968_v57 = vld [vmem:[#allocation5] sm:$0x1] }
 0x293   :  { %v1679_v0 = vmul.f32 1.442695, %v1676_v20 }
 0x295   :  { %2614 = vpow2.f32 %v1679_v0 }
 0x29e   :  { %v2613_v3 = vpop.eup %2612 }
 0x29f   :  { %v1681_v15 = vadd.f32 1.0, %v2613_v3  ;;  %v1684_v61 = vmul.f32 -0.5, %v2613_v3  ;;  %v1687_v63 = vand.u32 2147483647, %v2613_v3 }
 0x2a1   :  { %2616 = vlog2.f32 %v1681_v15  ;;  %v1685_v6 = vadd.f32 1.0, %v1684_v61  ;;  %vm1688_vm6 = vcmp.lt.f32.partialorder %v1687_v63, 0.0004427343 }
 0x2a2   :  { %v2615_v37 = vpop.eup %2614 }
 0x2a3   :  { %v1690_v24 = vadd.f32 1.0, %v2615_v37  ;;  %v1693_v9 = vmul.f32 -0.5, %v2615_v37  ;;  %v1696_v52 = vand.u32 2147483647, %v2615_v37  ;;  %v1686_v35 = vmul.f32 %v2613_v3, %v1685_v6 }
 0x2a5   :  { %2618 = vlog2.f32 %v1690_v24  ;;  %v1694_v10 = vadd.f32 1.0, %v1693_v9  ;;  %vm1697_vm7 = vcmp.lt.f32.partialorder %v1696_v52, 0.0004427343 }
 0x2a6   :  { %2620 = vrcp.f32 %v1968_v57 }
 0x2a7   :  { %v1695_v30 = vmul.f32 %v2615_v37, %v1694_v10 }
 0x2ae   :  { %v2617_v34 = vpop.eup %2616 }
 0x2af   :  { %v1683_v14 = vmul.f32 0.6931472, %v2617_v34 }
 0x2b1   :  { %v1689_v13 = vsel %vm1688_vm6, %v1686_v35, %v1683_v14 }
 0x2b2   :  { %v2619_v38 = vpop.eup %2618  ;;  %v1699_v40 = vsel %vm1673_vm8, %v1667_v48, %v1689_v13 }
 0x2b3   :  { %v1692_v41 = vmul.f32 0.6931472, %v2619_v38  ;;  %v2621_v46 = vpop.eup %2620 }
 0x2b4   :  { %1971 = vst [vmem:[#allocation25] sm:$0x1] %v2621_v46 }
 0x2b5   :  { %v1698_v53 = vsel %vm1697_vm7, %v1695_v30, %v1692_v41 }
 0x2b6   :  { %v1700_v45 = vsel %vm1674_vm9, %v1670_v51, %v1698_v53 }
 0x2b7   :  { %v1717_v59 = vpack.c.bf16 %v1700_v45, %v1699_v40 }
 0x2b9   :  { %1843 = vmatmul.mubr.bf16.vlgmr.msra.gmra.mxu1 %v1717_v59  ;;  %v1908_v59 = vld [vmem:[%s3505_s9] sm:$0xff]  ;;  %s2933_s9 = smov [#allocation22]  }
 0x2ba   :  { %s1990_s21 = sshll.u32 %s2933_s9, 4  ;;  %s1991_s21 = int_to_ptr.vmem [resolvable:$true] %s1990_s21 }
 0x2bb   :  { %s2818_s22 = scalar_lea.vmem %s1991_s21, 16  ;;  %s2822_s23 = scalar_lea.vmem %s1991_s21, 32 }
 0x2bc   :  { %p2819_p3 = scmp.ne.s32.totalorder %s1991_s21, %s2818_s22  ;;  %p2823_p4 = scmp.lt.s32.totalorder %s1991_s21, %s1991_s21 }
 0x2bd   :  { %p2824_p5 = scmp.lt.s32.totalorder %s2822_s23, %s2818_s22 }
 0x2bf   :  { %p2825_p6 = por %p2824_p5, %p2823_p4 }
 0x2c1   :  { %p2826_p7 = pnand %p2825_p6, %p2819_p3 }
 0x379   :  { %v1844_v21 = vpop.f32.mrf.mxu1 }
 0x37a   :  { %v1845_v39 = vadd.f32 %v1844_v21, %v1723_v22 }
 0x37b   :  { %v1846_v28 = vpop.f32.mrf.mxu1 }
 0x37c   :  { %v1847_v23 = vadd.f32 %v1846_v28, %v1727_v36 }
 0x37d   :  { %v1848_v17 = vpop.f32.mrf.mxu1 }
 0x37e   :  { %v1849_v62 = vadd.f32 %v1848_v17, %v1723_v22 }
 0x37f   :  { %v1850_v7 = vpop.f32.mrf.mxu1 }
 0x380   :  { %v1853_v42 = vadd.f32 %v1849_v62, %v1845_v39  ;;  %v1851_v4 = vadd.f32 %v1850_v7, %v1727_v36 }
 0x382   :  { %v1854_v50 = vrot.slane %v1853_v42, 4  ;;  %v1860_v1 = vadd.f32 %v1851_v4, %v1847_v23 }
 0x384   :  { %v1855_v26 = vadd.f32 %v1854_v50, %v1853_v42  ;;  %v1861_v49 = vrot.slane %v1860_v1, 4 }
 0x386   :  { %v1856_v48 = vrot.slane %v1855_v26, 2  ;;  %v1862_v44 = vadd.f32 %v1861_v49, %v1860_v1 }
 0x388   :  { %v1857_v11 = vadd.f32 %v1856_v48, %v1855_v26  ;;  %v1863_v2 = vrot.slane %v1862_v44, 2 }
 0x38a   :  { %v1858_v25 = vrot.slane %v1857_v11, 1  ;;  %v1864_v27 = vadd.f32 %v1863_v2, %v1862_v44 }
 0x38c   :  { %v1859_v31 = vadd.f32 %v1858_v25, %v1857_v11  ;;  %v1865_v5 = vrot.slane %v1864_v27, 1 }
 0x38e   :  { %v1868_v54 = vmul.f32 0.0625, %v1859_v31  ;;  %v1866_v51 = vadd.f32 %v1865_v5, %v1864_v27 }
 0x390   :  { %v1870_v19 = vsub.f32 %v1845_v39, %v1868_v54  ;;  %v1872_v60 = vsub.f32 %v1849_v62, %v1868_v54  ;;  %v1869_v20 = vmul.f32 0.0625, %v1866_v51 }
 0x392   :  { %v1874_v43 = vmul.f32 %v1870_v19, %v1870_v19  ;;  %v1876_v0 = vmul.f32 %v1872_v60, %v1872_v60  ;;  %v1871_v56 = vsub.f32 %v1847_v23, %v1869_v20  ;;  %v1873_v58 = vsub.f32 %v1851_v4, %v1869_v20 }
 0x394   :  { %v1875_v8 = vmul.f32 %v1871_v56, %v1871_v56  ;;  %v1877_v55 = vmul.f32 %v1873_v58, %v1873_v58  ;;  %v1878_v29 = vadd.f32 %v1876_v0, %v1874_v43 }
 0x396   :  { %v1885_v18 = vadd.f32 %v1877_v55, %v1875_v8  ;;  %v1879_v47 = vrot.slane %v1878_v29, 4 }
 0x398   :  { %v1886_v12 = vrot.slane %v1885_v18, 4  ;;  %v1880_v37 = vadd.f32 %v1879_v47, %v1878_v29 }
 0x39a   :  { %v1887_v3 = vadd.f32 %v1886_v12, %v1885_v18  ;;  %v1881_v61 = vrot.slane %v1880_v37, 2 }
 0x39c   :  { %v1888_v15 = vrot.slane %v1887_v3, 2  ;;  %v1882_v34 = vadd.f32 %v1881_v61, %v1880_v37 }
 0x39e   :  { %v1889_v24 = vadd.f32 %v1888_v15, %v1887_v3  ;;  %v1883_v14 = vrot.slane %v1882_v34, 1 }
 0x3a0   :  { %v1890_v57 = vrot.slane %v1889_v24, 1  ;;  %v1884_v10 = vadd.f32 %v1883_v14, %v1882_v34 }
 0x3a2   :  { %v1891_v9 = vadd.f32 %v1890_v57, %v1889_v24  ;;  %v1892_v52 = vmul.f32 0.0625, %v1884_v10 }
 0x3a4   :  { %v1893_v6 = vmul.f32 0.0625, %v1891_v9  ;;  %v1894_v38 = vadd.f32 1e-05, %v1892_v52 }
 0x3a6   :  { %v1895_v63 = vadd.f32 1e-05, %v1893_v6 }
 0x3a8   :  { %2622 = vrsqrt.f32 %v1895_v63 }
 0x3a9   :  { %2624 = vrsqrt.f32 %v1894_v38 }
 0x3b5   :  { %v2623_v35 = vpop.eup %2622 }
 0x3b6   :  { %v1899_v13 = vmul.f32 %v2623_v35, %v1871_v56  ;;  %v1901_v41 = vmul.f32 %v2623_v35, %v1873_v58  ;;  %v2625_v45 = vpop.eup %2624 }
 0x3b7   :  { %v1898_v32 = vmul.f32 %v2625_v45, %v1870_v19  ;;  %v1900_v28 = vmul.f32 %v2625_v45, %v1872_v60 }
 0x3b8   :  { %v1902_v30 = vmul.f32 0.5, %v1899_v13  ;;  %v1903_v46 = vmul.f32 0.5, %v1901_v41  ;;  %v1942_v7 = vadd.f32 1.0, %v1899_v13  ;;  %v1943_v49 = vadd.f32 1.0, %v1901_v41 }
 0x3b9   :  { %v1944_v50 = vmul.f32 %v1898_v32, %v1898_v32  ;;  %v1945_v11 = vmul.f32 %v1900_v28, %v1900_v28 }
 0x3ba   :  { %v1904_v53 = vmul.f32 1.442695, %v1902_v30  ;;  %v1906_v40 = vmul.f32 1.442695, %v1903_v46 }
 0x3bb   :  { %v1946_v26 = vsub.f32 %v1942_v7, %v1944_v50  ;;  %v1947_v2 = vsub.f32 %v1943_v49, %v1945_v11 }
 0x3bc   :  { %2626 = vpow2.f32 %v1904_v53 }
 0x3bd   :  { %2628 = vpow2.f32 %v1906_v40 }
 0x3c9   :  { %v2627_v33 = vpop.eup %2626 }
 0x3ca   :  { %v2629_v21 = vpop.eup %2628  ;;  %v1910_v22 = vmul.f32 %v2627_v33, %v1908_v59  ;;  %v1940_v4 = vmul.f32 %v2627_v33, %v2627_v33 }
 0x3cb   :  { %v1911_v36 = vmul.f32 %v2629_v21, %v1909_v16  ;;  %v1941_v44 = vmul.f32 %v2629_v21, %v2629_v21 }
 0x3cc   :  { %v1912_v17 = vadd.f32 %v1910_v22, %v1898_v32  ;;  %v1948_v48 = vsub.f32 %v1946_v26, %v1940_v4 }
 0x3cd   :  { %v1913_v39 = vadd.f32 %v1911_v36, %v1900_v28  ;;  %v1949_v25 = vsub.f32 %v1947_v2, %v1941_v44 }
 0x3ce   :  { %v1914_v62 = vmax.f32 %v1912_v17, 1e-20 }
 0x3cf   :  { %v1915_v23 = vmax.f32 %v1913_v39, 1e-20 }
 0x3d0   :  { %v1916_v42 = vmin.f32 %v1914_v62, 10.0 }
 0x3d1   :  { %v1917_v1 = vmin.f32 %v1915_v23, 10.0 }
 0x3d2   :  { %1918 = vmax.xlane.f32.xlu0 %v1916_v42 }
 0x3d3   :  { %1920 = vmax.xlane.f32.xlu1 %v1917_v1 }
 0x3d6   :  { %1950 = vadd.xlane.f32.xlu0 %v1948_v48 }
 0x3da   :  { %1952 = vadd.xlane.f32.xlu0 %v1949_v25 }
 0x45b   :  { %v1919_v27 = vpop.xlane.xlu0 %1918 }
 0x45c   :  { %v1921_v31 = vpop.xlane.xlu1 %1920  ;;  %v1922_v5 = vsub.f32 %v1916_v42, %v1919_v27 }
 0x45d   :  { %v1923_v54 = vsub.f32 %v1917_v1, %v1921_v31 }
 0x45e   :  { %v1924_v51 = vmul.f32 1.442695, %v1922_v5 }
 0x45f   :  { %v1951_v19 = vpop.xlane.xlu0 %1950  ;;  %v1926_v60 = vmul.f32 1.442695, %v1923_v54 }
 0x460   :  { %2630 = vpow2.f32 %v1924_v51  ;;  %v1954_v43 = vmul.f32 -0.5, %v1951_v19 }
 0x461   :  { %2632 = vpow2.f32 %v1926_v60 }
 0x463   :  { %v1953_v20 = vpop.xlane.xlu0 %1952 }
 0x464   :  { %v1955_v0 = vmul.f32 -0.5, %v1953_v20 }
 0x466   :  { %v1956_v56 = vadd.f32 %v1955_v0, %v1954_v43 }
 0x468   :  { %v1957_v58 = vrot.slane %v1956_v56, 4 }
 0x46a   :  { %v1958_v8 = vadd.f32 %v1957_v58, %v1956_v56 }
 0x46c   :  { %v1959_v55 = vrot.slane %v1958_v8, 2 }
 0x46d   :  { %v2631_v29 = vpop.eup %2630 }
 0x46e   :  { %v1960_v18 = vadd.f32 %v1959_v55, %v1958_v8  ;;  %1928 = vadd.xlane.f32.xlu0 %v2631_v29  ;;  %v2633_v47 = vpop.eup %2632 }
 0x470   :  { %v1961_v12 = vrot.slane %v1960_v18, 1 }
 0x472   :  { %1930 = vadd.xlane.f32.xlu0 %v2633_v47  ;;  %v1962_v3 = vadd.f32 %v1961_v12, %v1960_v18 }
 0x474   :  { %v1963_v15 = vmul.f32 0.0625, %v1962_v3 }
 0x476   :  { %1965 = vst.msk [vmem:[#allocation22] sm:$0x1] %vm1964_vm10, %v1963_v15 }
 0x477   :  { %2829 = shalt.err (!%p2826_p7)
}
 0x478   :  { %1993 = dma.vmem_to_hbm [thread:$0]  %s1991_s21, 16, %s3507_s11, [#allocation23]  }
 0x479   :  { %s2934_s24 = smov [#allocation24]  }
 0x47a   :  { %s2000_s25 = sshll.u32 %s2934_s24, 4  ;;  %s2001_s25 = int_to_ptr.vmem [resolvable:$true] %s2000_s25 }
 0x47b   :  { %s2838_s0 = scalar_lea.vmem %s2001_s25, 16  ;;  %s2842_s26 = scalar_lea.vmem %s2001_s25, 32 }
 0x47c   :  { %p2839_p8 = scmp.ne.s32.totalorder %s2001_s25, %s2838_s0  ;;  %p2843_p9 = scmp.lt.s32.totalorder %s2001_s25, %s2001_s25 }
 0x47d   :  { %p2844_p10 = scmp.lt.s32.totalorder %s2842_s26, %s2838_s0 }
 0x47f   :  { %p2845_p11 = por %p2844_p10, %p2843_p9 }
 0x481   :  { %p2846_p12 = pnand %p2845_p11, %p2839_p8 }
 0x483   :  { %2849 = shalt.err (!%p2846_p12)
}
 0x484   :  { %2003 = dma.vmem_to_hbm [thread:$0]  %s2001_s25, 16, %s3508_s12, [#allocation23]  }
 0x485   :  { %s2935_s14 = smov [#allocation25]  }
 0x486   :  { %s2010_s15 = sshll.u32 %s2935_s14, 4  ;;  %s2011_s15 = int_to_ptr.vmem [resolvable:$true] %s2010_s15 }
 0x487   :  { %s2858_s16 = scalar_lea.vmem %s2011_s15, 16  ;;  %s2862_s11 = scalar_lea.vmem %s2011_s15, 32 }
 0x488   :  { %p2859_p13 = scmp.ne.s32.totalorder %s2011_s15, %s2858_s16  ;;  %p2863_p0 = scmp.lt.s32.totalorder %s2011_s15, %s2011_s15 }
 0x489   :  { %p2864_p1 = scmp.lt.s32.totalorder %s2862_s11, %s2858_s16 }
 0x48b   :  { %p2865_p2 = por %p2864_p1, %p2863_p0 }
 0x48d   :  { %p2866_p3 = pnand %p2865_p2, %p2859_p13 }
 0x48f   :  { %2869 = shalt.err (!%p2866_p3)
}
 0x490   :  { %2013 = dma.vmem_to_hbm [thread:$0]  %s2011_s15, 16, %s3509_s13, [#allocation26]  }
 0x491   :  { %s2936_s12 = smov [#allocation21]  }
 0x492   :  { %s1977_s5 = sshll.u32 %s2936_s12, 4  ;;  %s1978_s5 = int_to_ptr.vmem [resolvable:$true] %s1977_s5 }
 0x493   :  { %s2878_s18 = scalar_lea.vmem %s1978_s5, 256  ;;  %p2883_p5 = scmp.lt.s32.totalorder %s1978_s5, %s1978_s5 }
 0x494   :  { %p2879_p4 = scmp.ne.s32.totalorder %s1978_s5, %s2878_s18  ;;  %p2884_p6 = scmp.lt.s32.totalorder %s2878_s18, %s2878_s18 }
 0x496   :  { %p2885_p7 = por %p2884_p6, %p2883_p5 }
 0x498   :  { %p2886_p8 = pnand %p2885_p7, %p2879_p4 }
 0x4f7   :  { %v1929_v37 = vpop.xlane.xlu0 %1928 }
 0x4f8   :  { %2634 = vrcp.f32 %v1929_v37 }
 0x4fb   :  { %v1931_v24 = vpop.xlane.xlu0 %1930 }
 0x4fc   :  { %2636 = vrcp.f32 %v1931_v24 }
 0x505   :  { %v2635_v57 = vpop.eup %2634 }
 0x506   :  { %v1936_v61 = vmul.f32 %v2635_v57, %v2631_v29 }
 0x508   :  { %1938 = vst [vmem:[#allocation21] sm:$0xff] %v1936_v61 }
 0x509   :  { %v2637_v9 = vpop.eup %2636 }
 0x50a   :  { %v1937_v6 = vmul.f32 %v2637_v9, %v2633_v47 }
 0x50c   :  { %1939 = vst [vmem:[#allocation21 + $0x8] sm:$0xff] %v1937_v6 }
 0x50d   :  { %2889 = shalt.err (!%p2886_p8)
}
 0x50e   :  { %1983 = dma.vmem_to_hbm [thread:$0]  %s1978_s5, 256, %s3506_s10, [#allocation8], %s2926_s2, %s2926_s2, %s2927_s3  }
 0x50f   :  { %2908 = dma.done.wait [#allocation8], 256  }
 0x510   :  { %2909 = vsyncadd [#allocation8], 4294967040 }
 0x511   :  { %2910 = dma.done.wait [#allocation23], 32  }
 0x512   :  { %2911 = vsyncadd [#allocation23], 4294967264 }
 0x513   :  { %2912 = dma.done.wait [#allocation26], 16  }
 0x514   :  { %2913 = vsyncadd [#allocation26], 4294967280 }
 0x515   :  { %2026 = vsyncpa [#allocation7], 1 }
 0x516   :  { %2027 = vsyncpa [#allocation10], 1 }
 0x517   :  { %2028 = vsyncpa [#allocation13], 1 }
 0x518   :  { %2029 = vsyncpa [#allocation16], 1 }
 0x519   :  { %2030 = vsyncpa [#allocation19], 1 }
 0x51a   :  { %2031 = vsyncpa [#allocation8], 1 }
 0x51b   :  { %2032 = vsyncpa [#allocation23], 1 }
 0x51c   :  { %2033 = vsyncpa [#allocation26], 1 }

</bundles_post_ra>
